<compile_context>
chip_gen: v7x
topology: tpu7x:2x2x1
jax: 0.10.0
libtpu: 0.0.40
codegen_flags: <defaults>
</compile_context>

<pallas_src>
import functools

import jax
import jax.numpy as jnp
from jax import lax
from jax.experimental import pallas as pl
from jax.experimental.pallas import tpu as pltpu

BN_EPS = 1e-5
C = 128          # padded channel width == lane width
PK_ROWS = 16     # packed small-parameter rows (13 used, padded to mult. of 8)


# ----------------------------- Pallas kernel --------------------------------
def cnn_kernel(x_ref, pk_ref, w2_ref, w3_ref, wf_ref, out_ref, *, seq_len):
    L = seq_len
    M = x_ref.shape[0]            # Bt * L rows, ordered (b, l)
    Bt = out_ref.shape[0]

    xs = x_ref[...]               # (M, 1)  float32
    pk = pk_ref[...]              # (16, 128) packed small params

    # Position-in-sequence of every row.  Sublane rolls wrap across sequence
    # (and batch-tile) boundaries, so wrapped rows are zeroed with these
    # hoisted f32 masks (multiply, not where).
    l_idx = lax.broadcasted_iota(jnp.int32, (M, 1), 0) % L
    not_first = (l_idx != 0).astype(jnp.float32)        # zero where l == 0
    not_last = (l_idx != (L - 1)).astype(jnp.float32)   # zero where l == L-1

    def prev(v):                  # v'[r] = v[r-1], zero at l == 0
        return pltpu.roll(v, 1, axis=0) * not_first

    def nxt(v):                   # v'[r] = v[r+1], zero at l == L-1
        return pltpu.roll(v, M - 1, axis=0) * not_last

    # ---- conv1 (Cin = 1): per-tap broadcast products, shift the outputs ----
    h = prev(xs * pk[0:1]) + xs * pk[1:2] + nxt(xs * pk[2:3])    # (M, 128)
    h = jnp.maximum(h + pk[3:4], 0.0) * pk[4:5] + pk[5:6]        # relu + bn1
    # lanes >= 32 of h are exactly zero (w1/b1/t1 zero-padded).

    # ---- conv2: dense K packing (3*32 taps -> 128 lanes), bf16 MXU ---------
    hp, hn = prev(h), nxt(h)
    packed2 = hp + pltpu.roll(h, 32, axis=1) + pltpu.roll(hn, 64, axis=1)
    z = jnp.dot(packed2.astype(jnp.bfloat16), w2_ref[...],
                preferred_element_type=jnp.float32)              # (M, 128)
    h = jnp.maximum(z + pk[6:7], 0.0) * pk[7:8] + pk[8:9]        # relu + bn2
    # lanes >= 64 of h are exactly zero (w2 cols / b2 / t2 zero-padded).

    # ---- conv3: dense K packing (3*64 taps -> 256 lanes), bf16 MXU ---------
    hp, hn = prev(h), nxt(h)
    slab_a = (hp + pltpu.roll(h, 64, axis=1)).astype(jnp.bfloat16)  # [prev|cen]
    packed3 = jnp.concatenate([slab_a, hn.astype(jnp.bfloat16)], axis=1)
    z = jnp.dot(packed3, w3_ref[...], preferred_element_type=jnp.float32)
    h = jnp.maximum(z + pk[9:10], 0.0) * pk[10:11] + pk[11:12]   # relu + bn3

    # ---- AdaptiveAvgPool1d(1): layout-free reshape + length-axis reduce ----
    pooled = jnp.sum(h.reshape(Bt, L, C), axis=1) * (1.0 / L)    # (Bt, 128)

    # ---- fc (dropout in eval mode = identity); tiny, keep f32 --------------
    out = jnp.dot(pooled, wf_ref[...], preferred_element_type=jnp.float32)
    out_ref[...] = (out + pk[12:13]).astype(out_ref.dtype)


# ------------------------------- wrapper ------------------------------------
def _vmem_capacity_bytes():
    try:
        return int(pltpu.get_tpu_info().vmem_capacity_bytes)
    except Exception:
        return 64 << 20   # conservative fallback: assume v7x-sized VMEM


def _pick_tiles(batch, seq_len):
    """Batch-tile size + vmem limit, per chip generation.

    per_row charges everything resident per activation row: the 128-lane
    padded, double-buffered x blocks (2 * 512 B), ~3 live f32 (M,128) copies
    (h + two shifted temps) and the bf16 packed matmul slabs.
    """
    big_vmem = _vmem_capacity_bytes() >= (100 << 20)      # v5e / v6e: 128 MiB
    budget = (48 << 20) if big_vmem else (20 << 20)       # v7x: 64 MiB phys
    per_row = 6 * 1024

    bt = (budget // (per_row * seq_len)) // 8 * 8
    bt = int(max(8, min(bt, 512)))

    b_ceil8 = pl.cdiv(batch, 8) * 8
    if b_ceil8 >= 16:                                     # >= 2 grid steps so
        bt = min(bt, max(8, (b_ceil8 // 2) // 8 * 8))     # both v7x TCs work
    bt = max(8, min(bt, b_ceil8))                         # don't over-pad

    vmem_limit = (96 << 20) if big_vmem else (48 << 20)
    return bt, vmem_limit


@jax.jit
def cnn_forward(x, p):
    B, L = x.shape
    d_model = p["wf"].shape[1]

    bt, vmem_limit = _pick_tiles(B, L)
    b_pad = pl.cdiv(B, bt) * bt
    m_tile = bt * L

    # ---- pack / pad parameters: every channel dim -> 128 lanes -------------
    def pad_cols(a):
        return jnp.pad(a, ((0, 0), (0, C - a.shape[1])))

    pk = jnp.zeros((PK_ROWS, C), jnp.float32)
    pk = pk.at[0:3].set(pad_cols(p["w1"]))                       # conv1 taps
    for i, name in enumerate(("b1", "s1", "t1", "b2", "s2", "t2",
                              "b3", "s3", "t3", "bf")):
        pk = pk.at[3 + i].set(pad_cols(p[name])[0])

    # conv2 dense-K packed weight: K rows [0:32)=prev, [32:64)=center,
    # [64:96)=next tap, rest zero; Cout 64 -> 128 lanes.  bf16 for the MXU.
    w2p = jnp.zeros((C, C), jnp.float32)
    w2p = w2p.at[0:32, 0:64].set(p["w2"][0])
    w2p = w2p.at[32:64, 0:64].set(p["w2"][1])
    w2p = w2p.at[64:96, 0:64].set(p["w2"][2])
    w2p = w2p.astype(jnp.bfloat16)

    # conv3 dense-K packed weight: K rows [0:64)=prev, [64:128)=center,
    # [128:192)=next tap, rest zero.
    w3p = jnp.zeros((2 * C, C), jnp.float32)
    w3p = w3p.at[0:64].set(p["w3"][0])
    w3p = w3p.at[64:128].set(p["w3"][1])
    w3p = w3p.at[128:192].set(p["w3"][2])
    w3p = w3p.astype(jnp.bfloat16)

    wfp = jnp.pad(p["wf"], ((0, 0), (0, C - d_model)))           # (128, 128)

    # ---- input: pad batch to a tile multiple, flatten to a (rows, 1) slab --
    x_pad = jnp.pad(x.astype(jnp.float32), ((0, b_pad - B), (0, 0)))
    x_flat = x_pad.reshape(b_pad * L, 1)

    # ---- cost estimate (helps XLA schedule around the custom call) ---------
    m_total = b_pad * L
    flops = (2 * m_total * C * C                 # conv2 (K = 128)
             + 2 * m_total * 2 * C * C           # conv3 (K = 256)
             + 2 * m_total * 3 * C               # conv1 broadcast taps
             + m_total * C                       # pooling reduce
             + 2 * b_pad * C * C)                # fc
    bytes_accessed = (4 * (x_flat.size + pk.size + wfp.size + b_pad * C)
                      + 2 * (w2p.size + w3p.size))
    cost = pl.CostEstimate(flops=flops, transcendentals=0,
                           bytes_accessed=bytes_accessed)

    out = pl.pallas_call(
        functools.partial(cnn_kernel, seq_len=L),
        out_shape=jax.ShapeDtypeStruct((b_pad, C), jnp.float32),
        grid=(b_pad // bt,),
        in_specs=[
            pl.BlockSpec((m_tile, 1), lambda i: (i, 0)),     # x rows of tile i
            pl.BlockSpec((PK_ROWS, C), lambda i: (0, 0)),    # packed params
            pl.BlockSpec((C, C), lambda i: (0, 0)),          # w2 packed (bf16)
            pl.BlockSpec((2 * C, C), lambda i: (0, 0)),      # w3 packed (bf16)
            pl.BlockSpec((C, C), lambda i: (0, 0)),          # wf (padded, f32)
        ],
        out_specs=pl.BlockSpec((bt, C), lambda i: (i, 0)),
        compiler_params=pltpu.CompilerParams(
            dimension_semantics=("parallel",),               # megacore on v7x
            vmem_limit_bytes=vmem_limit,
        ),
        cost_estimate=cost,
    )(x_flat, pk, w2p, w3p, wfp)

    return out[:B, :d_model]


# --------------------------- plain-JAX reference ----------------------------
def cnn_forward_ref(x, p):
    xm = jnp.concatenate([jnp.zeros_like(x[:, :1]), x[:, :-1]], axis=1)
    xp = jnp.concatenate([x[:, 1:], jnp.zeros_like(x[:, :1])], axis=1)
    w1 = p["w1"]
    h = xm[..., None] * w1[0] + x[..., None] * w1[1] + xp[..., None] * w1[2]
    h = jax.nn.relu(h + p["b1"]) * p["s1"] + p["t1"]

    def conv(h, w, b):
        hm = jnp.concatenate([jnp.zeros_like(h[:, :1]), h[:, :-1]], axis=1)
        hp = jnp.concatenate([h[:, 1:], jnp.zeros_like(h[:, :1])], axis=1)
        return (jnp.einsum("blc,cd->bld", hm, w[0])
                + jnp.einsum("blc,cd->bld", h, w[1])
                + jnp.einsum("blc,cd->bld", hp, w[2]) + b)

    h = jax.nn.relu(conv(h, p["w2"], p["b2"])) * p["s2"] + p["t2"]
    h = jax.nn.relu(conv(h, p["w3"], p["b3"])) * p["s3"] + p["t3"]
    pooled = h.mean(axis=1)
    return pooled @ p["wf"] + p["bf"]


# --------------------------- deterministic params ---------------------------
def init_params(key, d_model=32):
    ks = list(jax.random.split(key, 20))

    def nrm(k, shape, scale=0.1):
        return (scale * jax.random.normal(k, shape)).astype(jnp.float32)

    def bn_fold(kg, kb, km, kv, c):
        gamma = 1.0 + 0.1 * jax.random.normal(kg, (1, c))
        beta = 0.1 * jax.random.normal(kb, (1, c))
        mean = 0.1 * jax.random.normal(km, (1, c))
        var = jax.random.uniform(kv, (1, c), minval=0.5, maxval=1.5)
        s = gamma / jnp.sqrt(var + BN_EPS)
        t = beta - mean * s
        return s.astype(jnp.float32), t.astype(jnp.float32)

    p = {}
    # conv1: PyTorch weight (32, 1, 3) -> per-tap (3, 32); bias (32,) -> (1, 32)
    p["w1"] = nrm(ks[0], (3, 32))
    p["b1"] = nrm(ks[1], (1, 32))
    p["s1"], p["t1"] = bn_fold(ks[2], ks[3], ks[4], ks[5], 32)
    # conv2: PyTorch weight (64, 32, 3) -> per-tap (3, 32, 64)
    p["w2"] = nrm(ks[6], (3, 32, 64))
    p["b2"] = nrm(ks[7], (1, 64))
    p["s2"], p["t2"] = bn_fold(ks[8], ks[9], ks[10], ks[11], 64)
    # conv3: PyTorch weight (128, 64, 3) -> per-tap (3, 64, 128)
    p["w3"] = nrm(ks[12], (3, 64, 128))
    p["b3"] = nrm(ks[13], (1, 128))
    p["s3"], p["t3"] = bn_fold(ks[14], ks[15], ks[16], ks[17], 128)
    # fc: PyTorch weight (d_model, 128) -> transposed (128, d_model)
    p["wf"] = nrm(ks[18], (128, d_model))
    p["bf"] = nrm(ks[19], (1, d_model))
    return p


if __name__ == "__main__":
    key = jax.random.PRNGKey(0)
    kx, kp = jax.random.split(key)

    B, L, d_model = 2, 16, 32   # module: input_channels=1 (unsqueeze), output_dim=128
    x = jax.random.normal(kx, (B, L), dtype=jnp.float32)
    params = init_params(kp, d_model=d_model)

    out = cnn_forward(x, params)
    jax.block_until_ready(out)
    assert out.shape == (B, d_model), out.shape

    ref = cnn_forward_ref(x, params)
    # bf16 MXU operands (f32 accumulation) vs. the f32 reference.
    assert jnp.allclose(out, ref, atol=5e-3, rtol=3e-2), (
        float(jnp.max(jnp.abs(out - ref)))
    )

    print("KERNEL_OK")
</pallas_src>

<mosaic_0001>
module attributes {stable_mosaic.version = 11 : i64} {
  func.func @cnn_kernel(%arg0: i32, %arg1: memref<128x1xf32, #tpu.memory_space<vmem>>, %arg2: memref<16x128xf32, #tpu.memory_space<vmem>>, %arg3: memref<128x128xbf16, #tpu.memory_space<vmem>>, %arg4: memref<256x128xbf16, #tpu.memory_space<vmem>>, %arg5: memref<128x128xf32, #tpu.memory_space<vmem>>, %arg6: memref<8x128xf32, #tpu.memory_space<vmem>>) attributes {dimension_semantics = [#tpu.dimension_semantics<parallel>], iteration_bounds = array<i64: 1>, scalar_prefetch = 0 : i64, scratch_operands = 0 : i64, tpu.core_type = #tpu.core_type<tc>, window_params = [{transform_indices = @transform_0, window_bounds = array<i64: 128, 1>}, {pipeline_mode = #tpu.pipeline_mode<synchronous>, transform_indices = @transform_1, window_bounds = array<i64: 16, 128>}, {pipeline_mode = #tpu.pipeline_mode<synchronous>, transform_indices = @transform_2, window_bounds = array<i64: 128, 128>}, {pipeline_mode = #tpu.pipeline_mode<synchronous>, transform_indices = @transform_3, window_bounds = array<i64: 256, 128>}, {pipeline_mode = #tpu.pipeline_mode<synchronous>, transform_indices = @transform_4, window_bounds = array<i64: 128, 128>}, {transform_indices = @transform_5, window_bounds = array<i64: 8, 128>}]} {
    %c0 = arith.constant 0 : index
    %c0_0 = arith.constant 0 : index
    %0 = vector.load %arg1[%c0, %c0_0] : memref<128x1xf32, #tpu.memory_space<vmem>>, vector<128x1xf32>
    %c0_1 = arith.constant 0 : index
    %c0_2 = arith.constant 0 : index
    %1 = vector.load %arg2[%c0_1, %c0_2] : memref<16x128xf32, #tpu.memory_space<vmem>>, vector<16x128xf32>
    %2 = tpu.iota {dimensions = array<i32: 0>} : vector<128x1xi32>
    %c16_i32 = arith.constant 16 : i32
    %c0_i32 = arith.constant 0 : i32
    %3 = arith.cmpi eq, %c16_i32, %c0_i32 : i32
    %c1_i32 = arith.constant 1 : i32
    %4 = arith.select %3, %c1_i32, %c16_i32 : i32
    %5 = vector.broadcast %4 : i32 to vector<128x1xi32>
    %6 = arith.remsi %2, %5 : vector<128x1xi32>
    %c0_i32_3 = arith.constant 0 : i32
    %7 = vector.broadcast %c0_i32_3 : i32 to vector<128x1xi32>
    %8 = arith.cmpi ne, %6, %7 : vector<128x1xi32>
    %c0_i32_4 = arith.constant 0 : i32
    %9 = vector.broadcast %c0_i32_4 : i32 to vector<128x1xi32>
    %10 = arith.cmpi slt, %6, %9 : vector<128x1xi32>
    %c0_i32_5 = arith.constant 0 : i32
    %11 = arith.cmpi slt, %4, %c0_i32_5 : i32
    %12 = vector.broadcast %11 : i1 to vector<128x1xi1>
    %13 = vector.broadcast %12 : vector<128x1xi1> to vector<128x1xi1>
    %14 = arith.xori %10, %13 : vector<128x1xi1>
    %15 = arith.andi %14, %8 : vector<128x1xi1>
    %16 = vector.broadcast %4 : i32 to vector<128x1xi32>
    %17 = arith.addi %6, %16 : vector<128x1xi32>
    %18 = arith.select %15, %17, %6 : vector<128x1xi1>, vector<128x1xi32>
    %c0_i32_6 = arith.constant 0 : i32
    %19 = vector.broadcast %c0_i32_6 : i32 to vector<128x1xi32>
    %20 = arith.cmpi ne, %18, %19 : vector<128x1xi32>
    %21 = arith.extui %20 : vector<128x1xi1> to vector<128x1xi32>
    %22 = arith.sitofp %21 : vector<128x1xi32> to vector<128x1xf32>
    %c15_i32 = arith.constant 15 : i32
    %23 = vector.broadcast %c15_i32 : i32 to vector<128x1xi32>
    %24 = arith.cmpi ne, %18, %23 : vector<128x1xi32>
    %25 = arith.extui %24 : vector<128x1xi1> to vector<128x1xi32>
    %26 = arith.sitofp %25 : vector<128x1xi32> to vector<128x1xf32>
    %27 = vector.extract_strided_slice %1 {offsets = [0, 0], sizes = [1, 128], strides = [1, 1]} : vector<16x128xf32> to vector<1x128xf32>
    %28 = vector.broadcast %0 : vector<128x1xf32> to vector<128x128xf32>
    %29 = vector.broadcast %27 : vector<1x128xf32> to vector<128x128xf32>
    %30 = arith.mulf %28, %29 : vector<128x128xf32>
    %c1_i32_7 = arith.constant 1 : i32
    %31 = tpu.dynamic_rotate %30 by %c1_i32_7 dim 0 : vector<128x128xf32>, i32 -> vector<128x128xf32>
    %32 = vector.broadcast %22 : vector<128x1xf32> to vector<128x128xf32>
    %33 = arith.mulf %31, %32 : vector<128x128xf32>
    %34 = vector.extract_strided_slice %1 {offsets = [1, 0], sizes = [1, 128], strides = [1, 1]} : vector<16x128xf32> to vector<1x128xf32>
    %35 = vector.broadcast %0 : vector<128x1xf32> to vector<128x128xf32>
    %36 = vector.broadcast %34 : vector<1x128xf32> to vector<128x128xf32>
    %37 = arith.mulf %35, %36 : vector<128x128xf32>
    %38 = arith.addf %33, %37 : vector<128x128xf32>
    %39 = vector.extract_strided_slice %1 {offsets = [2, 0], sizes = [1, 128], strides = [1, 1]} : vector<16x128xf32> to vector<1x128xf32>
    %40 = vector.broadcast %0 : vector<128x1xf32> to vector<128x128xf32>
    %41 = vector.broadcast %39 : vector<1x128xf32> to vector<128x128xf32>
    %42 = arith.mulf %40, %41 : vector<128x128xf32>
    %c127_i32 = arith.constant 127 : i32
    %43 = tpu.dynamic_rotate %42 by %c127_i32 dim 0 : vector<128x128xf32>, i32 -> vector<128x128xf32>
    %44 = vector.broadcast %26 : vector<128x1xf32> to vector<128x128xf32>
    %45 = arith.mulf %43, %44 : vector<128x128xf32>
    %46 = arith.addf %38, %45 : vector<128x128xf32>
    %47 = vector.extract_strided_slice %1 {offsets = [3, 0], sizes = [1, 128], strides = [1, 1]} : vector<16x128xf32> to vector<1x128xf32>
    %48 = vector.broadcast %47 : vector<1x128xf32> to vector<128x128xf32>
    %49 = arith.addf %46, %48 : vector<128x128xf32>
    %cst = arith.constant 0.000000e+00 : f32
    %50 = vector.broadcast %cst : f32 to vector<128x128xf32>
    %51 = arith.maximumf %49, %50 : vector<128x128xf32>
    %52 = vector.extract_strided_slice %1 {offsets = [4, 0], sizes = [1, 128], strides = [1, 1]} : vector<16x128xf32> to vector<1x128xf32>
    %53 = vector.broadcast %52 : vector<1x128xf32> to vector<128x128xf32>
    %54 = arith.mulf %51, %53 : vector<128x128xf32>
    %55 = vector.extract_strided_slice %1 {offsets = [5, 0], sizes = [1, 128], strides = [1, 1]} : vector<16x128xf32> to vector<1x128xf32>
    %56 = vector.broadcast %55 : vector<1x128xf32> to vector<128x128xf32>
    %57 = arith.addf %54, %56 : vector<128x128xf32>
    %c1_i32_8 = arith.constant 1 : i32
    %58 = tpu.dynamic_rotate %57 by %c1_i32_8 dim 0 : vector<128x128xf32>, i32 -> vector<128x128xf32>
    %59 = vector.broadcast %22 : vector<128x1xf32> to vector<128x128xf32>
    %60 = arith.mulf %58, %59 : vector<128x128xf32>
    %c127_i32_9 = arith.constant 127 : i32
    %61 = tpu.dynamic_rotate %57 by %c127_i32_9 dim 0 : vector<128x128xf32>, i32 -> vector<128x128xf32>
    %62 = vector.broadcast %26 : vector<128x1xf32> to vector<128x128xf32>
    %63 = arith.mulf %61, %62 : vector<128x128xf32>
    %c32_i32 = arith.constant 32 : i32
    %64 = tpu.dynamic_rotate %57 by %c32_i32 dim 1 : vector<128x128xf32>, i32 -> vector<128x128xf32>
    %65 = arith.addf %60, %64 : vector<128x128xf32>
    %c64_i32 = arith.constant 64 : i32
    %66 = tpu.dynamic_rotate %63 by %c64_i32 dim 1 : vector<128x128xf32>, i32 -> vector<128x128xf32>
    %67 = arith.addf %65, %66 : vector<128x128xf32>
    %68 = arith.truncf %67 : vector<128x128xf32> to vector<128x128xbf16>
    %c0_10 = arith.constant 0 : index
    %c0_11 = arith.constant 0 : index
    %69 = vector.load %arg3[%c0_10, %c0_11] : memref<128x128xbf16, #tpu.memory_space<vmem>>, vector<128x128xbf16>
    %cst_12 = arith.constant dense<0.000000e+00> : vector<128x128xf32>
    %70 = tpu.matmul %68, %69, %cst_12 {dimension_numbers = #tpu.dot_dimension_numbers<[1], [0], [0], [1], [0, 0, 1, 1], [], []>} : vector<128x128xbf16>, vector<128x128xbf16>, vector<128x128xf32> -> vector<128x128xf32>
    %71 = vector.extract_strided_slice %1 {offsets = [6, 0], sizes = [1, 128], strides = [1, 1]} : vector<16x128xf32> to vector<1x128xf32>
    %72 = vector.broadcast %71 : vector<1x128xf32> to vector<128x128xf32>
    %73 = arith.addf %70, %72 : vector<128x128xf32>
    %cst_13 = arith.constant 0.000000e+00 : f32
    %74 = vector.broadcast %cst_13 : f32 to vector<128x128xf32>
    %75 = arith.maximumf %73, %74 : vector<128x128xf32>
    %76 = vector.extract_strided_slice %1 {offsets = [7, 0], sizes = [1, 128], strides = [1, 1]} : vector<16x128xf32> to vector<1x128xf32>
    %77 = vector.broadcast %76 : vector<1x128xf32> to vector<128x128xf32>
    %78 = arith.mulf %75, %77 : vector<128x128xf32>
    %79 = vector.extract_strided_slice %1 {offsets = [8, 0], sizes = [1, 128], strides = [1, 1]} : vector<16x128xf32> to vector<1x128xf32>
    %80 = vector.broadcast %79 : vector<1x128xf32> to vector<128x128xf32>
    %81 = arith.addf %78, %80 : vector<128x128xf32>
    %c1_i32_14 = arith.constant 1 : i32
    %82 = tpu.dynamic_rotate %81 by %c1_i32_14 dim 0 : vector<128x128xf32>, i32 -> vector<128x128xf32>
    %83 = vector.broadcast %22 : vector<128x1xf32> to vector<128x128xf32>
    %84 = arith.mulf %82, %83 : vector<128x128xf32>
    %c127_i32_15 = arith.constant 127 : i32
    %85 = tpu.dynamic_rotate %81 by %c127_i32_15 dim 0 : vector<128x128xf32>, i32 -> vector<128x128xf32>
    %86 = vector.broadcast %26 : vector<128x1xf32> to vector<128x128xf32>
    %87 = arith.mulf %85, %86 : vector<128x128xf32>
    %c64_i32_16 = arith.constant 64 : i32
    %88 = tpu.dynamic_rotate %81 by %c64_i32_16 dim 1 : vector<128x128xf32>, i32 -> vector<128x128xf32>
    %89 = arith.addf %84, %88 : vector<128x128xf32>
    %90 = arith.truncf %89 : vector<128x128xf32> to vector<128x128xbf16>
    %91 = arith.truncf %87 : vector<128x128xf32> to vector<128x128xbf16>
    %92 = tpu.concatenate %90, %91 in 1 : vector<128x128xbf16>, vector<128x128xbf16> -> vector<128x256xbf16>
    %c0_17 = arith.constant 0 : index
    %c0_18 = arith.constant 0 : index
    %93 = vector.load %arg4[%c0_17, %c0_18] : memref<256x128xbf16, #tpu.memory_space<vmem>>, vector<256x128xbf16>
    %cst_19 = arith.constant dense<0.000000e+00> : vector<128x128xf32>
    %94 = tpu.matmul %92, %93, %cst_19 {dimension_numbers = #tpu.dot_dimension_numbers<[1], [0], [0], [1], [0, 0, 1, 1], [], []>} : vector<128x256xbf16>, vector<256x128xbf16>, vector<128x128xf32> -> vector<128x128xf32>
    %95 = vector.extract_strided_slice %1 {offsets = [9, 0], sizes = [1, 128], strides = [1, 1]} : vector<16x128xf32> to vector<1x128xf32>
    %96 = vector.broadcast %95 : vector<1x128xf32> to vector<128x128xf32>
    %97 = arith.addf %94, %96 : vector<128x128xf32>
    %cst_20 = arith.constant 0.000000e+00 : f32
    %98 = vector.broadcast %cst_20 : f32 to vector<128x128xf32>
    %99 = arith.maximumf %97, %98 : vector<128x128xf32>
    %100 = vector.extract_strided_slice %1 {offsets = [10, 0], sizes = [1, 128], strides = [1, 1]} : vector<16x128xf32> to vector<1x128xf32>
    %101 = vector.broadcast %100 : vector<1x128xf32> to vector<128x128xf32>
    %102 = arith.mulf %99, %101 : vector<128x128xf32>
    %103 = vector.extract_strided_slice %1 {offsets = [11, 0], sizes = [1, 128], strides = [1, 1]} : vector<16x128xf32> to vector<1x128xf32>
    %104 = vector.broadcast %103 : vector<1x128xf32> to vector<128x128xf32>
    %105 = arith.addf %102, %104 : vector<128x128xf32>
    %106 = vector.shape_cast %105 : vector<128x128xf32> to vector<8x16x128xf32>
    %cst_21 = arith.constant dense<0.000000e+00> : vector<8x128xf32>
    %107 = vector.multi_reduction <add>, %106, %cst_21 [1] : vector<8x16x128xf32> to vector<8x128xf32>
    %cst_22 = arith.constant 6.250000e-02 : f32
    %108 = vector.broadcast %cst_22 : f32 to vector<8x128xf32>
    %109 = arith.mulf %107, %108 : vector<8x128xf32>
    %c0_23 = arith.constant 0 : index
    %c0_24 = arith.constant 0 : index
    %110 = vector.load %arg5[%c0_23, %c0_24] : memref<128x128xf32, #tpu.memory_space<vmem>>, vector<128x128xf32>
    %cst_25 = arith.constant dense<0.000000e+00> : vector<8x128xf32>
    %111 = tpu.matmul %109, %110, %cst_25 {dimension_numbers = #tpu.dot_dimension_numbers<[1], [0], [0], [1], [0, 0, 1, 1], [], []>} : vector<8x128xf32>, vector<128x128xf32>, vector<8x128xf32> -> vector<8x128xf32>
    %112 = vector.extract_strided_slice %1 {offsets = [12, 0], sizes = [1, 128], strides = [1, 1]} : vector<16x128xf32> to vector<1x128xf32>
    %113 = vector.broadcast %112 : vector<1x128xf32> to vector<8x128xf32>
    %114 = arith.addf %111, %113 : vector<8x128xf32>
    %c0_26 = arith.constant 0 : index
    %c0_27 = arith.constant 0 : index
    %115 = vector.load %arg6[%c0_26, %c0_27] : memref<8x128xf32, #tpu.memory_space<vmem>>, vector<8x128xf32>
    tpu.vector_store %arg6[%c0_26, %c0_27], %114 {strides = array<i32>} : memref<8x128xf32, #tpu.memory_space<vmem>>, vector<8x128xf32>,
    return
  }
  func.func @transform_0(%arg0: i32) -> (i32, i32) {
    %c0_i32 = arith.constant 0 : i32
    %c0_i32_0 = arith.constant 0 : i32
    return %arg0, %c0_i32 : i32, i32
  }
  func.func @transform_1(%arg0: i32) -> (i32, i32) {
    %c0_i32 = arith.constant 0 : i32
    %c0_i32_0 = arith.constant 0 : i32
    %c0_i32_1 = arith.constant 0 : i32
    return %c0_i32, %c0_i32_0 : i32, i32
  }
  func.func @transform_2(%arg0: i32) -> (i32, i32) {
    %c0_i32 = arith.constant 0 : i32
    %c0_i32_0 = arith.constant 0 : i32
    %c0_i32_1 = arith.constant 0 : i32
    return %c0_i32, %c0_i32_0 : i32, i32
  }
  func.func @transform_3(%arg0: i32) -> (i32, i32) {
    %c0_i32 = arith.constant 0 : i32
    %c0_i32_0 = arith.constant 0 : i32
    %c0_i32_1 = arith.constant 0 : i32
    return %c0_i32, %c0_i32_0 : i32, i32
  }
  func.func @transform_4(%arg0: i32) -> (i32, i32) {
    %c0_i32 = arith.constant 0 : i32
    %c0_i32_0 = arith.constant 0 : i32
    %c0_i32_1 = arith.constant 0 : i32
    return %c0_i32, %c0_i32_0 : i32, i32
  }
  func.func @transform_5(%arg0: i32) -> (i32, i32) {
    %c0_i32 = arith.constant 0 : i32
    %c0_i32_0 = arith.constant 0 : i32
    return %arg0, %c0_i32 : i32, i32
  }
}

</mosaic_0001>

<bundles_post_ra>
// kernel: cnn_forward.1
= control target key start
LH: loop header
LB: loop body
LE: loop exit
PB: predicated region body
PF: predicated region fallthrough
CT: control target
= control target key end

     0   :  { %v1999_v0 = vmov 0   ;;  %v39_v17 = vlaneseq  ;;  %v3184_v47 = vmov 0.0   ;;  %s2001_s13 = smov 32   ;;  %s3173_s0 = inlined_call_operand.vmem [shape: f32[128,1], index: 0, kind: input, shape index: {}]   ;;  %s3174_s2 = inlined_call_operand.vmem [shape: bf16[128,128], index: 2, kind: input, shape index: {}]   ;;  %s3175_s1 = inlined_call_operand.vmem [shape: f32[16,128], index: 1, kind: input, shape index: {}]   ;;  %s3176_s3 = inlined_call_operand.vmem [shape: bf16[256,128], index: 3, kind: input, shape index: {}]   ;;  %s3177_s4 = inlined_call_operand.vmem [shape: f32[128,128], index: 4, kind: input, shape index: {}]   ;;  %s3178_s5 = inlined_call_operand.vmem [shape: f32[8,128], index: 5, kind: output, shape index: {}]  }
   0x1   :  { %1973 = vset.pattern.permute.xlu1 %v1999_v0  ;;  %1972 = vset.pattern.permute.xlu0 %v1999_v0  ;;  %v24_v1 = vld [vmem:[%s3173_s0 + $0x18] sm:$0xff]  ;;  %v22_v2 = vld [vmem:[%s3173_s0 + $0x8] sm:$0xff]  ;;  %v25_v3 = vld [vmem:[%s3173_s0 + $0x20] sm:$0xff] }
   0x2   :  { %361 = vperm.xlu1 %1973, %v24_v1   ;;  %351 = vperm.xlu0 %1972, %v22_v2   ;;  %v23_v4 = vld [vmem:[%s3173_s0 + $0x10] sm:$0xff]  ;;  %v36_v5 = vld [vmem:[%s3173_s0 + $0x78] sm:$0xff]  ;;  %v21_v6 = vld [vmem:[%s3173_s0] sm:$0xff]  ;;  %v2083_v18 = vshrl.u32 %v39_v17, 7 }
   0x3   :  { %v27_v7 = vld [vmem:[%s3173_s0 + $0x30] sm:$0xff]  ;;  %v26_v8 = vld [vmem:[%s3173_s0 + $0x28] sm:$0xff]  ;;  %v29_v9 = vld [vmem:[%s3173_s0 + $0x40] sm:$0xff] }
   0x4   :  { %v28_v10 = vld [vmem:[%s3173_s0 + $0x38] sm:$0xff]  ;;  %v31_v11 = vld [vmem:[%s3173_s0 + $0x50] sm:$0xff]  ;;  %v30_v12 = vld [vmem:[%s3173_s0 + $0x48] sm:$0xff]  ;;  %v43_v21 = vadd.s32 24, %v2083_v18  ;;  %v44_v22 = vadd.s32 32, %v2083_v18  ;;  %v42_v23 = vadd.s32 16, %v2083_v18 }
   0x5   :  { %v33_v13 = vld [vmem:[%s3173_s0 + $0x60] sm:$0xff]  ;;  %v32_v14 = vld [vmem:[%s3173_s0 + $0x58] sm:$0xff]  ;;  %v35_v15 = vld [vmem:[%s3173_s0 + $0x70] sm:$0xff]  ;;  %v41_v26 = vadd.s32 8, %v2083_v18  ;;  %v3183_v27 = vsub.s32 0, %v2083_v18  ;;  %v55_v28 = vadd.s32 120, %v2083_v18 }
   0x6   :  { %366 = vperm.xlu1 %1973, %v25_v3   ;;  %356 = vperm.xlu0 %1972, %v23_v4   ;;  %v34_v16 = vld [vmem:[%s3173_s0 + $0x68] sm:$0xff]  ;;  %v1974_v19 = vld [vmem:[%s3174_s2] sm:$0xff]   ;;  %v1976_v24 = vld [vmem:[%s3174_s2 + $0x10] sm:$0xff]   ;;  %v81_v25 = vand.u32 15, %v43_v21  ;;  %v3182_v30 = vsub.s32 1, %v2083_v18  ;;  %v3181_v31 = vsub.s32 2, %v2083_v18 }
   0x7   :  { %v1975_v20 = vld [vmem:[%s3174_s2 + $0x8] sm:$0xff]   ;;  %1875 = vmatprep.subr.bf16.mxu0 %v1974_v19  ;;  %v2103_v29 = vld [vmem:[%s3175_s1] sm:$0xff]  ;;  %v88_v32 = vand.u32 15, %v44_v22  ;;  %v46_v33 = vadd.s32 48, %v2083_v18  ;;  %v1977_v34 = vld [vmem:[%s3174_s2 + $0x18] sm:$0xff]   ;;  %v74_v35 = vand.u32 15, %v42_v23 }
   0x8   :  { %1876 = vmatpush3.bf16.msra.mxu0 %v1974_v19  ;;  %v45_v36 = vadd.s32 40, %v2083_v18  ;;  %v48_v37 = vadd.s32 64, %v2083_v18  ;;  %vm299_vm0 = vcmp.ne.s32.totalorder %v81_v25, 15  ;;  %v67_v38 = vand.u32 15, %v41_v26 }
   0x9   :  { %1877 = vmatprep.subr.bf16.mxu0 %v1975_v20  ;;  %v60_v39 = vand.u32 15, %v2083_v18  ;;  %v47_v40 = vadd.s32 56, %v2083_v18  ;;  %v2118_v41 = vrot.slane %v2103_v29, %v3183_v27  ;;  %v165_v42 = vand.u32 15, %v55_v28 }
   0xa   :  { %421 = vperm.xlu1 %1973, %v36_v5   ;;  %346 = vperm.xlu0 %1972, %v21_v6   ;;  %v2123_v43 = vrot.slane %v2103_v29, %v3182_v30  ;;  %v2128_v44 = vrot.slane %v2103_v29, %v3181_v31  ;;  %vm2130_vm1 = vcmp.ne.s32.totalorder %v88_v32, 0  ;;  %v102_v46 = vand.u32 15, %v46_v33 }
   0xb   :  { %v2135_v48 = vsel %vm299_vm0, 1.0, %v3184_v47  ;;  %vm250_vm2 = vcmp.ne.s32.totalorder %v74_v35, 0  ;;  %v95_v49 = vand.u32 15, %v45_v36  ;;  %v116_v50 = vand.u32 15, %v48_v37 }
   0xc   :  { %1878 = vmatpush3.bf16.msra.mxu0 %v1975_v20  ;;  %vm2137_vm3 = vcmp.ne.s32.totalorder %v67_v38, 15  ;;  %vm2141_vm4 = vcmp.ne.s32.totalorder %v60_v39, 0  ;;  %v3180_v53 = vsub.s32 3, %v2083_v18  ;;  %v109_v54 = vand.u32 15, %v47_v40 }
   0xd   :  { %1879 = vmatprep.subr.bf16.mxu0 %v1976_v24  ;;  %vm2146_vm5 = vcmp.ne.s32.totalorder %v165_v42, 15  ;;  %v49_v56 = vadd.s32 72, %v2083_v18  ;;  %v50_v57 = vadd.s32 80, %v2083_v18  ;;  %v52_v58 = vadd.s32 96, %v2083_v18 }
   0xe   :  { %376 = vperm.xlu1 %1973, %v27_v7   ;;  %371 = vperm.xlu0 %1972, %v26_v8   ;;  %v2156_v59 = vsel %vm2130_vm1, 1.0, %v3184_v47  ;;  %vm460_vm6 = vcmp.lt.s32.totalorder %v2083_v18, 1  ;;  %v2160_v60 = vsel %vm250_vm2, 1.0, %v3184_v47  ;;  %vm2162_vm7 = vcmp.ne.s32.totalorder %v102_v46, 0 }
   0xf   :  { %3205 = vst [vmem:[#allocation2_spill] sm:$0xff] %v2156_v59  ;;  %3206 = vst [vmem:[#allocation3_spill] sm:$0xff] %v2160_v60  ;;  %v3179_v62 = vsub.s32 4, %v2083_v18  ;;  %vm301_vm8 = vcmp.ne.s32.totalorder %v95_v49, 15  ;;  %vm256_vm9 = vcmp.ne.s32.totalorder %v116_v50, 0  ;;  %v51_v1 = vadd.s32 88, %v2083_v18 }
  0x10   :  { %1880 = vmatpush3.bf16.msra.mxu0 %v1976_v24  ;;  %v54_v2 = vadd.s32 112, %v2083_v18  ;;  %vm565_vm10 = vcmp.lt.s32.totalorder %v2083_v18, 7  ;;  %v2173_v3 = vsel %vm2137_vm3, 1.0, %v3184_v47  ;;  %v2178_v4 = vsel %vm2141_vm4, 1.0, %v3184_v47 }
  0x11   :  { %1881 = vmatprep.subr.bf16.mxu0 %v1977_v34  ;;  %v2183_v5 = vsel %vm2146_vm5, 1.0, %v3184_v47  ;;  %vm303_vm11 = vcmp.ne.s32.totalorder %v109_v54, 15  ;;  %v2188_v6 = vrot.slane %v2103_v29, %v3180_v53  ;;  %v123_v7 = vand.u32 15, %v49_v56 }
  0x12   :  { %386 = vperm.xlu1 %1973, %v29_v9   ;;  %381 = vperm.xlu0 %1972, %v28_v10   ;;  %v130_v8 = vand.u32 15, %v50_v57  ;;  %v144_v9 = vand.u32 15, %v52_v58  ;;  %v2193_v10 = vsel %vm2162_vm7, 1.0, %v3184_v47  ;;  %v2210_v17 = vsel %vm303_vm11, 1.0, %v3184_v47 }
  0x13   :  { %3209 = vst [vmem:[#allocation4_spill] sm:$0xff] %v2193_v10  ;;  %v137_v19 = vand.u32 15, %v51_v1  ;;  %v158_v20 = vand.u32 15, %v54_v2  ;;  %vm2221_vm13 = vcmp.ne.s32.totalorder %v123_v7, 15  ;;  %v2232_v35 = vadd.s32 104, %v2083_v18 }
  0x14   :  { %1882 = vmatpush3.bf16.msra.mxu0 %v1977_v34  ;;  %vm258_vm12 = vcmp.ne.s32.totalorder %v130_v8, 0  ;;  %vm2225_vm14 = vcmp.ne.s32.totalorder %v144_v9, 0  ;;  %v672_v34 = vsub.s32 5, %v2083_v18  ;;  %v2250_v51 = vsel %vm2221_vm13, 1.0, %v3184_v47 }
  0x15   :  { %vm307_vm15 = vcmp.ne.s32.totalorder %v137_v19, 15  ;;  %v2241_v46 = vsel %vm258_vm12, 1.0, %v3184_v47  ;;  %vm262_vm0 = vcmp.ne.s32.totalorder %v158_v20, 0  ;;  %v2255_v52 = vsel %vm2225_vm14, 1.0, %v3184_v47 }
  0x16   :  { %396 = vperm.xlu1 %1973, %v31_v11   ;;  %391 = vperm.xlu0 %1972, %v30_v12   ;;  %v2196_v11 = vsel %vm301_vm8, 1.0, %v3184_v47  ;;  %v2201_v12 = vrot.slane %v2103_v29, %v3179_v62  ;;  %v2262_v55 = vsel %vm307_vm15, 1.0, %v3184_v47  ;;  %v2265_v56 = vrot.slane %v2103_v29, %v672_v34 }
  0x17   :  { %v2272_v8 = vsel %vm262_vm0, 1.0, %v3184_v47  ;;  %vm2004_vm2 = vmmov 0   ;;  %vm1648_vm3 = vcmask 1041409   ;;  %vm1650_vm4 = vcmask 1042434  }
  0x18   :  { %vm1652_vm5 = vcmask 1043459   ;;  %vm1656_vm7 = vcmask 1045509   ;;  %vm1658_vm8 = vcmask 1046534  }
  0x1a   :  { %406 = vperm.xlu1 %1973, %v33_v13   ;;  %401 = vperm.xlu0 %1972, %v32_v14   ;;  %v2204_v13 = vsel %vm256_vm9, 1.0, %v3184_v47  ;;  %vm1660_vm9 = vcmask 1047559  }
  0x1b   :  { %3210 = vst [vmem:[#allocation5_spill] sm:$0xff] %v2204_v13 }
  0x1e   :  { %416 = vperm.xlu1 %1973, %v35_v15   ;;  %411 = vperm.xlu0 %1972, %v34_v16  }
  0x81   :  { %v362_v63 = vpop.permute.xlu1 %361  ;;  %v352_v0 = vpop.permute.xlu0 %351 }
  0x82   :  { %v2207_v14 = vmul.f32 %v2118_v41, %v352_v0  ;;  %v431_v21 = vmul.f32 %v2118_v41, %v362_v63  ;;  %v536_v25 = vmul.f32 %v2128_v44, %v362_v63  ;;  %v2238_v45 = vmul.f32 %v2128_v44, %v352_v0 }
  0x83   :  { %v500_v58 = vmul.f32 %v2123_v43, %v362_v63  ;;  %v498_v9 = vmul.f32 %v2123_v43, %v352_v0 }
  0x84   :  { %v445_v36 = vrot.slane %v2207_v14, 7  ;;  %v447_v42 = vrot.slane %v431_v21, 7  ;;  %v552_v49 = vrot.slane %v536_v25, 1  ;;  %v550_v19 = vrot.slane %v2238_v45, 1 }
  0x85   :  { %v367_v15 = vpop.permute.xlu1 %366  ;;  %v357_v16 = vpop.permute.xlu0 %356 }
  0x86   :  { %v2214_v22 = vmul.f32 %v2118_v41, %v367_v15  ;;  %v2217_v23 = vmul.f32 %v2128_v44, %v367_v15  ;;  %v430_v24 = vmul.f32 %v2118_v41, %v357_v16  ;;  %v535_v38 = vmul.f32 %v2128_v44, %v357_v16 }
  0x87   :  { %v501_v21 = vmul.f32 %v2123_v43, %v367_v15  ;;  %v499_v0 = vmul.f32 %v2123_v43, %v357_v16 }
  0x88   :  { %v3186_v32 = vrot.slane %v2214_v22, 7  ;;  %v446_v33 = vrot.slane %v430_v24, 7  ;;  %v553_v37 = vrot.slane %v2217_v23, 1  ;;  %v551_v1 = vrot.slane %v535_v38, 1 }
  0x89   :  { %v422_v39 = vpop.permute.xlu1 %421  ;;  %v347_v40 = vpop.permute.xlu0 %346 }
  0x8a   :  { %v474_v50 = vsel %vm460_vm6, %v445_v36, %v446_v33  ;;  %v472_v54 = vsel %vm460_vm6, %v447_v42, %v3186_v32  ;;  %v577_v61 = vsel %vm565_vm10, %v552_v49, %v553_v37  ;;  %v473_v29 = vsel %vm460_vm6, %v446_v33, %v447_v42 }
  0x8b   :  { %v479_v20 = vmul.f32 %v2160_v60, %v474_v50  ;;  %v481_v63 = vmul.f32 %v2156_v59, %v472_v54  ;;  %v2282_v23 = vmul.f32 %v2118_v41, %v422_v39  ;;  %v428_v24 = vmul.f32 %v2118_v41, %v347_v40 }
  0x8c   :  { %v585_v25 = vmul.f32 %v2135_v48, %v577_v61  ;;  %v516_v33 = vadd.f32 %v500_v58, %v473_v29  ;;  %v578_v34 = vsel %vm565_vm10, %v551_v1, %v552_v49  ;;  %v533_v15 = vmul.f32 %v2128_v44, %v347_v40 }
  0x8d   :  { %v377_v2 = vpop.permute.xlu1 %376  ;;  %v372_v7 = vpop.permute.xlu0 %371  ;;  %v515_v50 = vadd.f32 %v499_v0, %v479_v20  ;;  %v579_v54 = vsel %vm565_vm10, %v550_v19, %v551_v1  ;;  %v2298_v16 = vmul.f32 %v2123_v43, %v422_v39  ;;  %v2301_v61 = vmul.f32 %v2128_v44, %v422_v39 }
  0x8e   :  { %v2288_v26 = vmul.f32 %v2118_v41, %v377_v2  ;;  %v433_v28 = vmul.f32 %v2118_v41, %v372_v7  ;;  %v538_v38 = vmul.f32 %v2128_v44, %v372_v7  ;;  %v517_v58 = vadd.f32 %v501_v21, %v481_v63 }
  0x8f   :  { %v3188_v29 = vrot.slane %v2282_v23, 7  ;;  %v444_v49 = vrot.slane %v428_v24, 7  ;;  %v2305_v62 = vmul.f32 %v2128_v44, %v377_v2  ;;  %v2310_v1 = vmul.f32 %v2173_v3, %v579_v54 }
  0x90   :  { %v450_v53 = vrot.slane %v2288_v26, 7  ;;  %v449_v31 = vrot.slane %v433_v28, 7  ;;  %v554_v20 = vrot.slane %v538_v38, 1  ;;  %v497_v30 = vmul.f32 %v2123_v43, %v347_v40 }
  0x91   :  { %v387_v42 = vpop.permute.xlu1 %386  ;;  %v382_v45 = vpop.permute.xlu0 %381  ;;  %v549_v39 = vrot.slane %v533_v15, 1  ;;  %v2314_v21 = vadd.f32 %v578_v34, %v515_v50  ;;  %v3187_v24 = vrot.slane %v2301_v61, 1  ;;  %v503_v27 = vmul.f32 %v2123_v43, %v377_v2 }
  0x92   :  { %v436_v0 = vmul.f32 %v2118_v41, %v387_v42  ;;  %v435_v63 = vmul.f32 %v2118_v41, %v382_v45  ;;  %v576_v26 = vsel %vm565_vm10, %v553_v37, %v554_v20  ;;  %v475_v38 = vsel %vm460_vm6, %v444_v49, %v445_v36 }
  0x93   :  { %v476_v40 = vsel %vm460_vm6, %v3188_v29, %v444_v49  ;;  %v555_v34 = vrot.slane %v2305_v62, 1  ;;  %v502_v15 = vmul.f32 %v2123_v43, %v372_v7  ;;  %v470_v37 = vsel %vm460_vm6, %v449_v31, %v450_v53 }
  0x94   :  { %v452_v50 = vrot.slane %v436_v0, 7  ;;  %v541_v54 = vmul.f32 %v2128_v44, %v387_v42  ;;  %v451_v14 = vrot.slane %v435_v63, 7  ;;  %v580_v36 = vsel %vm565_vm10, %v549_v39, %v550_v19 }
  0x95   :  { %v2320_v28 = vpop.permute.xlu1 %396  ;;  %v392_v2 = vpop.permute.xlu0 %391  ;;  %v602_v47 = vadd.f32 %v576_v26, %v517_v58  ;;  %v540_v57 = vmul.f32 %v2128_v44, %v382_v45  ;;  %v2338_v32 = vadd.f32 %v585_v25, %v516_v33  ;;  %v477_v62 = vmul.f32 %v2178_v4, %v476_v40 }
  0x96   :  { %v514_v49 = vadd.f32 %v498_v9, %v475_v38  ;;  %v2345_v7 = vsel %vm565_vm10, %v3187_v24, %v549_v39  ;;  %v468_v0 = vsel %vm460_vm6, %v451_v14, %v452_v50  ;;  %v3215_v63 = vrot.slane %v2214_v22, 7 }
  0x97   :  { %v483_v25 = vmul.f32 %v2193_v10, %v470_v37  ;;  %v575_v33 = vsel %vm565_vm10, %v554_v20, %v555_v34  ;;  %v505_v9 = vmul.f32 %v2123_v43, %v387_v42  ;;  %v557_v58 = vrot.slane %v541_v54, 1 }
  0x98   :  { %v471_v19 = vsel %vm460_vm6, %v3215_v63, %v449_v31  ;;  %v556_v26 = vrot.slane %v540_v57, 1  ;;  %v2359_v39 = vmul.f32 %v2128_v44, %v2320_v28  ;;  %v437_v38 = vmul.f32 %v2118_v41, %v392_v2 }
  0x99   :  { %v407_v40 = vpop.permute.xlu1 %406  ;;  %v622_v22 = vadd.f32 %v2188_v6, %v602_v47  ;;  %v485_v31 = vmul.f32 %v2204_v13, %v468_v0  ;;  %v438_v37 = vmul.f32 %v2118_v41, %v2320_v28  ;;  %v542_v20 = vmul.f32 %v2128_v44, %v392_v2  ;;  %v402_v63 = vpop.permute.xlu0 %401 }
  0x9a   :  { %v513_v42 = vadd.f32 %v497_v30, %v477_v62  ;;  %v469_v57 = vsel %vm460_vm6, %v450_v53, %v451_v14  ;;  %v504_v54 = vmul.f32 %v2123_v43, %v382_v45  ;;  %v559_v24 = vrot.slane %v2359_v39, 1 }
  0x9b   :  { %v518_v29 = vadd.f32 %v502_v15, %v471_v19  ;;  %v453_v10 = vrot.slane %v437_v38, 7  ;;  %v558_v59 = vrot.slane %v542_v20, 1  ;;  %v2372_v47 = vmul.f32 %v2118_v41, %v407_v40  ;;  %v1978_v20 = vld [vmem:[%s3174_s2 + $0x20] sm:$0xff]  }
  0x9c   :  { %v587_v0 = vmul.f32 %v2196_v11, %v575_v33  ;;  %v519_v13 = vadd.f32 %v503_v27, %v483_v25  ;;  %v573_v60 = vsel %vm565_vm10, %v556_v26, %v557_v58  ;;  %v439_v30 = vmul.f32 %v2118_v41, %v402_v63  ;;  %1883 = vmatprep.subr.bf16.mxu0 %v1978_v20 }
  0x9d   :  { %v638_v62 = vmax.f32 %v622_v22, 0.0  ;;  %v520_v53 = vadd.f32 %v504_v54, %v469_v57  ;;  %v454_v14 = vrot.slane %v438_v37, 7  ;;  %v521_v45 = vadd.f32 %v505_v9, %v485_v31  ;;  %1884 = vmatpush3.bf16.msra.mxu0 %v1978_v20 }
  0x9e   :  { %v467_v15 = vsel %vm460_vm6, %v452_v50, %v453_v10  ;;  %v506_v19 = vmul.f32 %v2123_v43, %v392_v2  ;;  %v571_v33 = vsel %vm565_vm10, %v558_v59, %v559_v24  ;;  %v572_v27 = vsel %vm565_vm10, %v557_v58, %v558_v59 }
  0x9f   :  { %v574_v25 = vsel %vm565_vm10, %v555_v34, %v556_v26  ;;  %v589_v38 = vmul.f32 %v2210_v17, %v573_v60  ;;  %v456_v9 = vrot.slane %v2372_v47, 7  ;;  %v455_v22 = vrot.slane %v439_v30, 7 }
  0xa0   :  { %v598_v31 = vadd.f32 %v580_v36, %v513_v42  ;;  %v2391_v50 = vadd.f32 %v587_v0, %v518_v29  ;;  %v545_v2 = vmul.f32 %v2128_v44, %v407_v40  ;;  %v599_v37 = vadd.f32 %v2310_v1, %v514_v49  ;;  %v417_v49 = vpop.permute.xlu1 %416  ;;  %v412_v0 = vpop.permute.xlu0 %411 }
  0xa1   :  { %v466_v59 = vsel %vm460_vm6, %v453_v10, %v454_v14  ;;  %v522_v34 = vadd.f32 %v506_v19, %v467_v15  ;;  %v591_v60 = vmul.f32 %v2250_v51, %v571_v33  ;;  %v606_v58 = vadd.f32 %v572_v27, %v521_v45  ;;  %v1979_v33 = vld [vmem:[%s3174_s2 + $0x28] sm:$0xff]  }
  0xa2   :  { %v658_v26 = vmul.f32 %v2201_v12, %v638_v62  ;;  %v2402_v36 = vadd.f32 %v574_v25, %v519_v13  ;;  %v507_v29 = vmul.f32 %v2123_v43, %v2320_v28  ;;  %v619_v1 = vadd.f32 %v2188_v6, %v599_v37  ;;  %1885 = vmatprep.subr.bf16.mxu0 %v1979_v33 }
  0xa3   :  { %v3216_v42 = vand.u32 15, %v2232_v35  ;;  %v605_v10 = vadd.f32 %v589_v38, %v520_v53  ;;  %v509_v54 = vmul.f32 %v2123_v43, %v407_v40  ;;  %v464_v13 = vsel %vm460_vm6, %v455_v22, %v456_v9  ;;  %1886 = vmatpush3.bf16.msra.mxu0 %v1979_v33 }
  0xa4   :  { %v544_v28 = vmul.f32 %v2128_v44, %v402_v63  ;;  %v487_v30 = vmul.f32 %v2241_v46, %v466_v59  ;;  %v561_v35 = vrot.slane %v545_v2, 1  ;;  %v508_v62 = vmul.f32 %v2123_v43, %v402_v63 }
  0xa5   :  { %vm2409_vm1 = vcmp.ne.s32.totalorder %v3216_v42, 15  ;;  %v635_v45 = vmax.f32 %v619_v1, 0.0  ;;  %v2421_v15 = vadd.f32 %v591_v60, %v522_v34  ;;  %v626_v53 = vadd.f32 %v2188_v6, %v606_v58 }
  0xa6   :  { %v2425_v40 = vmul.f32 %v2128_v44, %v417_v49  ;;  %v618_v19 = vadd.f32 %v2188_v6, %v598_v31  ;;  %v465_v27 = vsel %vm460_vm6, %v454_v14, %v455_v22  ;;  %v489_v25 = vmul.f32 %v2255_v52, %v464_v13 }
  0xa7   :  { %v655_v63 = vmul.f32 %v2201_v12, %v635_v45  ;;  %v441_v38 = vmul.f32 %v2118_v41, %v412_v0  ;;  %v560_v2 = vrot.slane %v544_v28, 1  ;;  %v442_v37 = vmul.f32 %v2118_v41, %v417_v49 }
  0xa8   :  { %v634_v20 = vmax.f32 %v618_v19, 0.0  ;;  %v546_v59 = vmul.f32 %v2128_v44, %v412_v0  ;;  %v2438_v31 = vadd.f32 %v507_v29, %v487_v30  ;;  %v621_v14 = vadd.f32 %v2188_v6, %v2338_v32  ;;  %v1980_v32 = vld [vmem:[%s3174_s2 + $0x30] sm:$0xff]  }
  0xa9   :  { %v2441_v34 = vadd.f32 %v2265_v56, %v655_v63  ;;  %v620_v22 = vadd.f32 %v2188_v6, %v2314_v21  ;;  %v563_v60 = vrot.slane %v2425_v40, 1  ;;  %v457_v58 = vrot.slane %v441_v38, 7  ;;  %1887 = vmatprep.subr.bf16.mxu0 %v1980_v32 }
  0xaa   :  { %v654_v41 = vmul.f32 %v2201_v12, %v634_v20  ;;  %v562_v1 = vrot.slane %v546_v59, 1  ;;  %v642_v44 = vmax.f32 %v626_v53, 0.0  ;;  %v524_v42 = vadd.f32 %v508_v62, %v465_v27  ;;  %1888 = vmatpush3.bf16.msra.mxu0 %v1980_v32 }
  0xab   :  { %788 = vrot.lane.b32.xlu1 %v2441_v34, %s2001_s13  ;;  %v525_v29 = vadd.f32 %v509_v54, %v489_v25  ;;  %v637_v13 = vmax.f32 %v621_v14, 0.0  ;;  %v569_v21 = vsel %vm565_vm10, %v560_v2, %v561_v35  ;;  %v570_v28 = vsel %vm565_vm10, %v559_v24, %v560_v2 }
  0xac   :  { %v458_v30 = vrot.slane %v442_v37, 7  ;;  %v2461_v62 = vadd.f32 %v2265_v56, %v654_v41  ;;  %v511_v45 = vmul.f32 %v2123_v43, %v417_v49  ;;  %v568_v54 = vsel %vm565_vm10, %v561_v35, %v562_v1 }
  0xad   :  { %v657_v53 = vmul.f32 %v2201_v12, %v637_v13  ;;  %v636_v19 = vmax.f32 %v620_v22, 0.0  ;;  %v3219_v39 = vmov 0.0   ;;  %v463_v49 = vsel %vm460_vm6, %v456_v9, %v457_v58 }
  0xae   :  { %786 = vrot.lane.b32.xlu0 %v2461_v62, %s2001_s13  ;;  %v2472_v24 = vsel %vm2409_vm1, 1.0, %v3219_v39  ;;  %v567_v35 = vsel %vm565_vm10, %v562_v1, %v563_v60  ;;  %v2483_v33 = vadd.f32 %v2265_v56, %v658_v26  ;;  %v610_v27 = vadd.f32 %v568_v54, %v525_v29 }
  0xaf   :  { %v2486_v25 = vadd.f32 %v2265_v56, %v657_v53  ;;  %v656_v57 = vmul.f32 %v2201_v12, %v636_v19  ;;  %v623_v47 = vadd.f32 %v2188_v6, %v2391_v50  ;;  %v662_v9 = vmul.f32 %v2201_v12, %v642_v44 }
  0xb0   :  { %v510_v63 = vmul.f32 %v2123_v43, %v412_v0  ;;  %v625_v38 = vadd.f32 %v2188_v6, %v605_v10  ;;  %v624_v26 = vadd.f32 %v2188_v6, %v2402_v36  ;;  %v593_v2 = vmul.f32 %v2262_v55, %v569_v21  ;;  %v1981_v43 = vld [vmem:[%s3174_s2 + $0x38] sm:$0xff]   ;;  %s2002_s2 = smov 64  }
  0xb1   :  { %v739_v37 = vrot.slane %v2441_v34, 1  ;;  %v462_v20 = vsel %vm460_vm6, %v457_v58, %v458_v30  ;;  %792 = vrot.lane.b32.xlu1 %v2486_v25, %s2001_s13  ;;  %v2503_v50 = vadd.f32 %v2265_v56, %v656_v57  ;;  %v595_v36 = vmul.f32 %v2472_v24, %v567_v35  ;;  %1889 = vmatprep.subr.bf16.mxu0 %v1981_v43 }
  0xb2   :  { %v526_v10 = vadd.f32 %v510_v63, %v463_v49  ;;  %v738_v0 = vrot.slane %v2461_v62, 1  ;;  %v640_v59 = vmax.f32 %v624_v26, 0.0  ;;  %v630_v14 = vadd.f32 %v2188_v6, %v610_v27  ;;  %1890 = vmatpush3.bf16.msra.mxu0 %v1981_v43 }
  0xb3   :  { %v740_v22 = vrot.slane %v2503_v50, 1  ;;  %790 = vrot.lane.b32.xlu0 %v2503_v50, %s2001_s13  ;;  %v742_v41 = vrot.slane %v2483_v33, 1  ;;  %v639_v58 = vmax.f32 %v623_v47, 0.0  ;;  %v3220_v1 = vrot.slane %v2282_v23, 7 }
  0xb4   :  { %v491_v29 = vmul.f32 %v2272_v8, %v462_v20  ;;  %v641_v13 = vmax.f32 %v625_v38, 0.0  ;;  %v627_v32 = vadd.f32 %v2188_v6, %v2421_v15  ;;  %v609_v21 = vadd.f32 %v593_v2, %v524_v42 }
  0xb5   :  { %v461_v44 = vsel %vm460_vm6, %v458_v30, %v3220_v1  ;;  %v741_v54 = vrot.slane %v2486_v25, 1  ;;  %v767_v53 = vsel %vm565_vm10, %v739_v37, %v740_v22  ;;  %v660_v19 = vmul.f32 %v2201_v12, %v640_v59 }
  0xb6   :  { %v608_v23 = vadd.f32 %v570_v28, %v2438_v31  ;;  %v611_v49 = vadd.f32 %v595_v36, %v526_v10  ;;  %v771_v30 = vmul.f32 %v2173_v3, %v767_v53  ;;  %v768_v35 = vsel %vm565_vm10, %v738_v0, %v739_v37 }
  0xb7   :  { %v646_v15 = vmax.f32 %v630_v14, 0.0  ;;  %834 = vrot.lane.b32.xlu0 %v768_v35, %s2002_s2  ;;  %v765_v42 = vsel %vm565_vm10, %v741_v54, %v742_v41  ;;  %v659_v27 = vmul.f32 %v2201_v12, %v639_v58  ;;  %v2539_v31 = vadd.f32 %v2265_v56, %v662_v9 }
  0xb8   :  { %v528_v28 = vadd.f32 %v2298_v16, %v461_v44  ;;  %v527_v57 = vadd.f32 %v511_v45, %v491_v29  ;;  %836 = vrot.lane.b32.xlu1 %v771_v30, %s2002_s2  ;;  %v661_v47 = vmul.f32 %v2201_v12, %v641_v13  ;;  %v643_v63 = vmax.f32 %v627_v32, 0.0 }
  0xb9   :  { %v597_v38 = vmul.f32 %v2183_v5, %v2345_v7  ;;  %v2547_v26 = vadd.f32 %v2265_v56, %v660_v19  ;;  %v629_v2 = vadd.f32 %v2188_v6, %v609_v21  ;;  %v773_v37 = vmul.f32 %v2135_v48, %v765_v42 }
  0xba   :  { %v766_v9 = vsel %vm565_vm10, %v740_v22, %v741_v54  ;;  %v628_v16 = vadd.f32 %v2188_v6, %v608_v23  ;;  %v631_v45 = vadd.f32 %v2188_v6, %v611_v49  ;;  %v3221_v20 = vrot.slane %v2301_v61, 1 }
  0xbb   :  { %v666_v43 = vmul.f32 %v2201_v12, %v646_v15  ;;  %838 = vrot.lane.b32.xlu0 %v766_v9, %s2002_s2  ;;  %v679_v10 = vadd.f32 %v2265_v56, %v659_v27  ;;  %v746_v36 = vrot.slane %v2539_v31, 1  ;;  %v681_v59 = vadd.f32 %v2265_v56, %v661_v47 }
  0xbc   :  { %v566_v7 = vsel %vm565_vm10, %v563_v60, %v3221_v20  ;;  %840 = vrot.lane.b32.xlu1 %v773_v37, %s2002_s2  ;;  %v663_v14 = vmul.f32 %v2201_v12, %v643_v63  ;;  %v613_v61 = vadd.f32 %v597_v38, %v528_v28  ;;  %v744_v40 = vrot.slane %v2547_v26, 1 }
  0xbd   :  { %v612_v22 = vadd.f32 %v566_v7, %v527_v57  ;;  %v645_v58 = vmax.f32 %v629_v2, 0.0  ;;  %v690_v60 = vrot.slane %v2461_v62, 7  ;;  %v691_v1 = vrot.slane %v2441_v34, 7 }
  0xbe   :  { %v644_v44 = vmax.f32 %v628_v16, 0.0  ;;  %v647_v29 = vmax.f32 %v631_v45, 0.0  ;;  %v633_v13 = vadd.f32 %v2188_v6, %v613_v61  ;;  %v743_v21 = vrot.slane %v679_v10, 1 }
  0xbf   :  { %v632_v32 = vadd.f32 %v2188_v6, %v612_v22  ;;  %794 = vrot.lane.b32.xlu0 %v2483_v33, %s2001_s13  ;;  %v2577_v54 = vsel %vm460_vm6, %v690_v60, %v691_v1  ;;  %v692_v53 = vrot.slane %v2503_v50, 7  ;;  %v693_v19 = vrot.slane %v2486_v25, 7 }
  0xc0   :  { %796 = vrot.lane.b32.xlu1 %v679_v10, %s2001_s13  ;;  %v745_v34 = vrot.slane %v681_v59, 1  ;;  %v2583_v23 = vadd.f32 %v2265_v56, %v666_v43  ;;  %v649_v49 = vmax.f32 %v633_v13, 0.0  ;;  %v763_v30 = vsel %vm565_vm10, %v743_v21, %v744_v40 }
  0xc1   :  { %v648_v6 = vmax.f32 %v632_v32, 0.0  ;;  %v683_v35 = vadd.f32 %v2265_v56, %v663_v14  ;;  %v665_v15 = vmul.f32 %v2201_v12, %v645_v58  ;;  %v2591_v50 = vsel %vm460_vm6, %v692_v53, %v693_v19 }
  0xc2   :  { %v664_v25 = vmul.f32 %v2201_v12, %v644_v44  ;;  %v667_v42 = vmul.f32 %v2201_v12, %v647_v29  ;;  %v669_v27 = vmul.f32 %v2201_v12, %v649_v49  ;;  %v2601_v57 = vsel %vm460_vm6, %v691_v1, %v692_v53 }
  0xc3   :  { %v668_v28 = vmul.f32 %v2201_v12, %v648_v6  ;;  %798 = vrot.lane.b32.xlu0 %v2547_v26, %s2001_s13  ;;  %v694_v47 = vrot.slane %v2483_v33, 7  ;;  %v695_v63 = vrot.slane %v679_v10, 7  ;;  %v696_v38 = vrot.slane %v2547_v26, 7 }
  0xc4   :  { %800 = vrot.lane.b32.xlu1 %v681_v59, %s2001_s13  ;;  %v775_v2 = vmul.f32 %v2196_v11, %v763_v30  ;;  %v764_v12 = vsel %vm565_vm10, %v742_v41, %v743_v21  ;;  %v761_v37 = vsel %vm565_vm10, %v745_v34, %v746_v36  ;;  %v2616_v9 = vadd.f32 %v2265_v56, %v669_v27 }
  0xc5   :  { %v2620_v26 = vsel %vm460_vm6, %v694_v47, %v695_v63  ;;  %v2624_v16 = vsel %vm460_vm6, %v693_v19, %v694_v47  ;;  %v697_v33 = vrot.slane %v681_v59, 7  ;;  %v2628_v41 = vsel %vm460_vm6, %v695_v63, %v696_v38 }
  0xc6   :  { %v685_v45 = vadd.f32 %v2265_v56, %v665_v15  ;;  %v684_v20 = vadd.f32 %v2265_v56, %v664_v25  ;;  %v687_v7 = vadd.f32 %v2265_v56, %v667_v42  ;;  %v705_v43 = vrot.slane %v2616_v9, 7 }
  0xc7   :  { %842 = vrot.lane.b32.xlu0 %v764_v12, %s2002_s2  ;;  %v688_v10 = vadd.f32 %v2265_v56, %v668_v28  ;;  %v2638_v14 = vsel %vm460_vm6, %v696_v38, %v697_v33  ;;  %v698_v59 = vrot.slane %v2539_v31, 7  ;;  %v699_v61 = vrot.slane %v683_v35, 7 }
  0xc8   :  { %844 = vrot.lane.b32.xlu1 %v775_v2, %s2002_s2  ;;  %v721_v22 = vsel %vm460_vm6, %v705_v43, %v690_v60  ;;  %v777_v58 = vmul.f32 %v2210_v17, %v761_v37  ;;  %v762_v1 = vsel %vm565_vm10, %v744_v40, %v745_v34  ;;  %v700_v29 = vrot.slane %v684_v20, 7 }
  0xc9   :  { %v2649_v56 = vsel %vm460_vm6, %v698_v59, %v699_v61  ;;  %v2653_v44 = vsel %vm460_vm6, %v697_v33, %v698_v59  ;;  %v701_v13 = vrot.slane %v685_v45, 7  ;;  %v702_v32 = vrot.slane %v2583_v23, 7 }
  0xca   :  { %v703_v60 = vrot.slane %v687_v7, 7  ;;  %v704_v21 = vrot.slane %v688_v10, 7  ;;  %v2664_v53 = vsel %vm460_vm6, %v699_v61, %v700_v29  ;;  %v748_v30 = vrot.slane %v684_v20, 1 }
  0xcb   :  { %846 = vrot.lane.b32.xlu0 %v762_v1, %s2002_s2  ;;  %v2660_v40 = vsel %vm460_vm6, %v700_v29, %v701_v13  ;;  %v2668_v19 = vsel %vm460_vm6, %v701_v13, %v702_v32  ;;  %v747_v15 = vrot.slane %v683_v35, 1  ;;  %v750_v42 = vrot.slane %v2583_v23, 1 }
  0xcc   :  { %848 = vrot.lane.b32.xlu1 %v777_v58, %s2002_s2  ;;  %v2672_v34 = vsel %vm460_vm6, %v702_v32, %v703_v60  ;;  %v2676_v49 = vsel %vm460_vm6, %v704_v21, %v705_v43  ;;  %v2680_v6 = vsel %vm460_vm6, %v703_v60, %v704_v21  ;;  %v749_v27 = vrot.slane %v685_v45, 1  ;;  %v3222_v58 = vld [vmem:[#allocation3_spill] sm:$0xff] }
  0xcd   :  { %v759_v25 = vsel %vm565_vm10, %v747_v15, %v748_v30  ;;  %v760_v47 = vsel %vm565_vm10, %v746_v36, %v747_v15  ;;  %v751_v36 = vrot.slane %v687_v7, 1  ;;  %v753_v2 = vrot.slane %v2616_v9, 1 }
  0xce   :  { %v779_v28 = vmul.f32 %v2250_v51, %v759_v25  ;;  %v758_v38 = vsel %vm565_vm10, %v748_v30, %v749_v27  ;;  %v722_v62 = vmul.f32 %v2178_v4, %v721_v22  ;;  %v724_v1 = vmul.f32 %v3222_v58, %v2601_v57 }
  0xcf   :  { %802 = vrot.lane.b32.xlu0 %v2539_v31, %s2001_s13  ;;  %v752_v31 = vrot.slane %v688_v10, 1  ;;  %v756_v33 = vsel %vm565_vm10, %v750_v42, %v751_v36 }
  0xd0   :  { %804 = vrot.lane.b32.xlu1 %v683_v35, %s2001_s13  ;;  %v757_v35 = vsel %vm565_vm10, %v749_v27, %v750_v42 }
  0xd1   :  { %v781_v63 = vmul.f32 %v2262_v55, %v757_v35  ;;  %v755_v12 = vsel %vm565_vm10, %v751_v36, %v752_v31  ;;  %v3223_v35 = vld [vmem:[#allocation2_spill] sm:$0xff] }
  0xd2   :  { %v783_v37 = vmul.f32 %v2472_v24, %v755_v12  ;;  %v726_v57 = vmul.f32 %v3223_v35, %v2624_v16 }
  0xd3   :  { %806 = vrot.lane.b32.xlu0 %v684_v20, %s2001_s13  ;;  %v754_v20 = vsel %vm565_vm10, %v752_v31, %v753_v2 }
  0xd4   :  { %808 = vrot.lane.b32.xlu1 %v685_v45, %s2001_s13 }
  0xd7   :  { %850 = vrot.lane.b32.xlu0 %v760_v47, %s2002_s2 }
  0xd8   :  { %852 = vrot.lane.b32.xlu1 %v779_v28, %s2002_s2 }
  0xdb   :  { %854 = vrot.lane.b32.xlu0 %v758_v38, %s2002_s2 }
  0xdc   :  { %856 = vrot.lane.b32.xlu1 %v781_v63, %s2002_s2 }
  0xdf   :  { %810 = vrot.lane.b32.xlu0 %v2583_v23, %s2001_s13  ;;  %v769_v23 = vsel %vm565_vm10, %v753_v2, %v738_v0 }
  0xe0   :  { %812 = vrot.lane.b32.xlu1 %v687_v7, %s2001_s13  ;;  %v785_v45 = vmul.f32 %v2183_v5, %v769_v23 }
  0xe3   :  { %814 = vrot.lane.b32.xlu0 %v688_v10, %s2001_s13 }
  0xe4   :  { %816 = vrot.lane.b32.xlu1 %v2616_v9, %s2001_s13 }
  0xe7   :  { %858 = vrot.lane.b32.xlu0 %v756_v33, %s2002_s2 }
  0xe8   :  { %860 = vrot.lane.b32.xlu1 %v783_v37, %s2002_s2 }
  0xeb   :  { %862 = vrot.lane.b32.xlu0 %v754_v20, %s2002_s2 }
  0xec   :  { %864 = vrot.lane.b32.xlu1 %v785_v45, %s2002_s2 }
 0x11d   :  { %v789_v9 = vpop.permute.xlu1 %788 }
 0x11e   :  { %v819_v0 = vadd.f32 %v789_v9, %v2577_v54 }
 0x120   :  { %v787_v7 = vpop.permute.xlu0 %786 }
 0x121   :  { %v818_v59 = vadd.f32 %v787_v7, %v722_v62 }
 0x123   :  { %v793_v43 = vpop.permute.xlu1 %792 }
 0x124   :  { %v821_v21 = vadd.f32 %v793_v43, %v2591_v50  ;;  %v3224_v50 = vld [vmem:[#allocation4_spill] sm:$0xff] }
 0x125   :  { %v791_v10 = vpop.permute.xlu0 %790  ;;  %v728_v2 = vmul.f32 %v3224_v50, %v2628_v41 }
 0x126   :  { %v820_v60 = vadd.f32 %v791_v10, %v724_v1 }
 0x129   :  { %v835_v61 = vpop.permute.xlu0 %834 }
 0x12a   :  { %v837_v29 = vpop.permute.xlu1 %836  ;;  %v866_v13 = vadd.f32 %v835_v61, %v818_v59 }
 0x12b   :  { %v867_v32 = vadd.f32 %v837_v29, %v819_v0  ;;  %v3225_v0 = vld [vmem:[#allocation5_spill] sm:$0xff] }
 0x12c   :  { %v730_v41 = vmul.f32 %v3225_v0, %v2653_v44 }
 0x12d   :  { %v839_v30 = vpop.permute.xlu0 %838  ;;  %v882_v15 = vpack.c.bf16 %v867_v32, %v866_v13 }
 0x12e   :  { %v841_v25 = vpop.permute.xlu1 %840  ;;  %v868_v42 = vadd.f32 %v839_v30, %v820_v60 }
 0x12f   :  { %v869_v27 = vadd.f32 %v841_v25, %v821_v21  ;;  %1891 = vmatprep.mubr.bf16.mxu0 %v882_v15 }
 0x131   :  { %v883_v22 = vpack.c.bf16 %v869_v27, %v868_v42  ;;  %v795_v28 = vpop.permute.xlu0 %794 }
 0x132   :  { %v797_v47 = vpop.permute.xlu1 %796  ;;  %v822_v38 = vadd.f32 %v795_v28, %v726_v57 }
 0x133   :  { %1892 = vmatmul.mubr.bf16.vlgmr.msra.gmra.mrb[0].mxu0 %v883_v22  ;;  %v823_v31 = vadd.f32 %v797_v47, %v2620_v26 }
 0x135   :  { %v799_v54 = vpop.permute.xlu0 %798 }
 0x136   :  { %v801_v63 = vpop.permute.xlu1 %800  ;;  %v824_v23 = vadd.f32 %v799_v54, %v728_v2 }
 0x137   :  { %v825_v45 = vadd.f32 %v801_v63, %v2638_v14  ;;  %v732_v14 = vmul.f32 %v2241_v46, %v2664_v53  ;;  %v734_v53 = vmul.f32 %v2255_v52, %v2668_v19 }
 0x139   :  { %v843_v36 = vpop.permute.xlu0 %842 }
 0x13a   :  { %v845_v12 = vpop.permute.xlu1 %844  ;;  %v870_v37 = vadd.f32 %v843_v36, %v822_v38 }
 0x13b   :  { %v871_v33 = vadd.f32 %v845_v12, %v823_v31 }
 0x13d   :  { %v884_v20 = vpack.c.bf16 %v871_v33, %v870_v37  ;;  %v847_v9 = vpop.permute.xlu0 %846 }
 0x13e   :  { %v849_v7 = vpop.permute.xlu1 %848  ;;  %v872_v43 = vadd.f32 %v847_v9, %v824_v23 }
 0x13f   :  { %v873_v10 = vadd.f32 %v849_v7, %v825_v45  ;;  %1895 = vmatprep.mubr.bf16.mxu0 %v884_v20 }
 0x141   :  { %v885_v16 = vpack.c.bf16 %v873_v10, %v872_v43  ;;  %v803_v62 = vpop.permute.xlu0 %802  ;;  %v1985_v43 = vld [vmem:[%s3176_s3 + $0x8] sm:$0xff]   ;;  %v1986_v10 = vld [vmem:[%s3176_s3 + $0x50] sm:$0xff]  }
 0x142   :  { %v805_v59 = vpop.permute.xlu1 %804  ;;  %v826_v1 = vadd.f32 %v803_v62, %v730_v41  ;;  %v1988_v62 = vld [vmem:[%s3176_s3 + $0x58] sm:$0xff]   ;;  %v1991_v41 = vld [vmem:[%s3176_s3 + $0x20] sm:$0xff]  }
 0x143   :  { %1896 = vmatmul.mubr.bf16.gmra.mrb[4].mxu0 %v885_v16  ;;  %v827_v29 = vadd.f32 %v805_v59, %v2649_v56  ;;  %v1987_v16 = vld [vmem:[%s3176_s3 + $0x10] sm:$0xff]   ;;  %v1989_v59 = vld [vmem:[%s3176_s3 + $0x18] sm:$0xff]  }
 0x145   :  { %v807_v26 = vpop.permute.xlu0 %806 }
 0x146   :  { %v809_v61 = vpop.permute.xlu1 %808  ;;  %v828_v30 = vadd.f32 %v807_v26, %v732_v14  ;;  %v1990_v26 = vld [vmem:[%s3176_s3 + $0x60] sm:$0xff]   ;;  %v908_v14 = vsub.s32 6, %v2083_v18 }
 0x147   :  { %v829_v15 = vadd.f32 %v809_v61, %v2660_v40  ;;  %v736_v40 = vmul.f32 %v2272_v8, %v2680_v6  ;;  %v1983_v6 = vld [vmem:[%s3176_s3] sm:$0xff]   ;;  %v1992_v61 = vld [vmem:[%s3176_s3 + $0x68] sm:$0xff]  }
 0x149   :  { %v851_v13 = vpop.permute.xlu0 %850 }
 0x14a   :  { %v853_v32 = vpop.permute.xlu1 %852  ;;  %v874_v60 = vadd.f32 %v851_v13, %v826_v1  ;;  %v1993_v1 = vld [vmem:[%s3176_s3 + $0x28] sm:$0xff]   ;;  %v1995_v13 = vld [vmem:[%s3176_s3 + $0x30] sm:$0xff]  }
 0x14b   :  { %v875_v21 = vadd.f32 %v853_v32, %v827_v29  ;;  %v1994_v29 = vld [vmem:[%s3176_s3 + $0x70] sm:$0xff]   ;;  %v1998_v32 = vld [vmem:[%s3175_s1] sm:$0xff] }
 0x14d   :  { %v886_v25 = vpack.c.bf16 %v875_v21, %v874_v60  ;;  %v855_v42 = vpop.permute.xlu0 %854  ;;  %v2796_v60 = vrot.slane %v1998_v32, %v908_v14  ;;  %v1073_v21 = vsub.s32 7, %v2083_v18 }
 0x14e   :  { %v857_v27 = vpop.permute.xlu1 %856  ;;  %v876_v22 = vadd.f32 %v855_v42, %v828_v30 }
 0x14f   :  { %v877_v28 = vadd.f32 %v857_v27, %v829_v15  ;;  %1899 = vmatprep.mubr.bf16.mxu0 %v886_v25  ;;  %v2802_v15 = vld [vmem:[%s3175_s1 + $0x8] sm:$0xff]  ;;  %v2805_v42 = vrot.slane %v1998_v32, %v1073_v21 }
 0x151   :  { %v887_v44 = vpack.c.bf16 %v877_v28, %v876_v22  ;;  %v811_v47 = vpop.permute.xlu0 %810  ;;  %v1996_v22 = vld [vmem:[%s3176_s3 + $0x78] sm:$0xff]  }
 0x152   :  { %v813_v54 = vpop.permute.xlu1 %812  ;;  %v830_v63 = vadd.f32 %v811_v47, %v734_v53  ;;  %v1997_v28 = vld [vmem:[%s3176_s3 + $0x38] sm:$0xff]  }
 0x153   :  { %1900 = vmatmul.mubr.bf16.gmra.mrb[8].mxu0 %v887_v44  ;;  %v831_v38 = vadd.f32 %v813_v54, %v2672_v34  ;;  %v1982_v34 = vld [vmem:[%s3176_s3 + $0x40] sm:$0xff]  }
 0x154   :  { %1794 = vmatprep.subr.bf16.mxu1 %v1982_v34 }
 0x155   :  { %v815_v56 = vpop.permute.xlu0 %814  ;;  %1795 = vmatpush3.bf16.msra.mxu1 %v1983_v6 }
 0x156   :  { %v817_v57 = vpop.permute.xlu1 %816  ;;  %v832_v37 = vadd.f32 %v815_v56, %v736_v40 }
 0x157   :  { %v833_v33 = vadd.f32 %v817_v57, %v2676_v49  ;;  %v1984_v49 = vld [vmem:[%s3176_s3 + $0x48] sm:$0xff]   ;;  %v3226_v57 = vsub.s32 0, %v2083_v18 }
 0x158   :  { %1796 = vmatprep.subr.bf16.mxu1 %v1984_v49 }
 0x159   :  { %v859_v31 = vpop.permute.xlu0 %858  ;;  %1797 = vmatpush3.bf16.msra.mxu1 %v1985_v43 }
 0x15a   :  { %v861_v36 = vpop.permute.xlu1 %860  ;;  %v878_v2 = vadd.f32 %v859_v31, %v830_v63  ;;  %1798 = vmatprep.subr.bf16.mxu1 %v1986_v10  ;;  %v2818_v63 = vrot.slane %v2802_v15, %v3226_v57 }
 0x15b   :  { %v879_v12 = vadd.f32 %v861_v36, %v831_v38 }
 0x15d   :  { %v888_v23 = vpack.c.bf16 %v879_v12, %v878_v2  ;;  %v863_v45 = vpop.permute.xlu0 %862  ;;  %1799 = vmatpush3.bf16.msra.mxu1 %v1987_v16 }
 0x15e   :  { %v865_v20 = vpop.permute.xlu1 %864  ;;  %v880_v9 = vadd.f32 %v863_v45, %v832_v37  ;;  %1800 = vmatprep.subr.bf16.mxu1 %v1988_v62 }
 0x15f   :  { %v881_v7 = vadd.f32 %v865_v20, %v833_v33  ;;  %1903 = vmatprep.mubr.bf16.mxu0 %v888_v23 }
 0x161   :  { %v889_v19 = vpack.c.bf16 %v881_v7, %v880_v9  ;;  %1801 = vmatpush3.bf16.msra.mxu1 %v1989_v59 }
 0x162   :  { %1802 = vmatprep.subr.bf16.mxu1 %v1990_v26 }
 0x163   :  { %1904 = vmatmul.mubr.bf16.gmra.mrb[12].mxu0 %v889_v19 }
 0x164   :  { %1939 = vmatprep.mubr.msk.f32.mxu0 %vm2004_vm2, %v3219_v39  ;;  %v1629_v39 = vld [vmem:[%s3177_s4 + $0x48] sm:$0xff] }
 0x165   :  { %1803 = vmatpush3.bf16.msra.mxu1 %v1991_v41 }
 0x166   :  { %1804 = vmatprep.subr.bf16.mxu1 %v1992_v61 }
 0x169   :  { %1805 = vmatpush3.bf16.msra.mxu1 %v1993_v1 }
 0x16a   :  { %1806 = vmatprep.subr.bf16.mxu1 %v1994_v29 }
 0x16d   :  { %1807 = vmatpush3.bf16.msra.mxu1 %v1995_v13 }
 0x16e   :  { %1808 = vmatprep.subr.bf16.mxu1 %v1996_v22 }
 0x171   :  { %1809 = vmatpush3.bf16.msra.mxu1 %v1997_v28 }
 0x206   :  { %v1893_v30 = vpop.f32.mrb[0].mxu0 }
 0x207   :  { %v1001_v25 = vadd.f32 %v1893_v30, %v2796_v60  ;;  %v992_v27 = vpop.f32.mrb[1].mxu0 }
 0x208   :  { %v993_v44 = vadd.f32 %v992_v27, %v2796_v60  ;;  %v1894_v47 = vpop.f32.mrb[2].mxu0 }
 0x209   :  { %v1057_v54 = vmax.f32 %v1001_v25, 0.0  ;;  %v1004_v56 = vadd.f32 %v1894_v47, %v2796_v60  ;;  %v995_v53 = vpop.f32.mrb[3].mxu0 }
 0x20a   :  { %v1055_v38 = vmax.f32 %v993_v44, 0.0  ;;  %v996_v31 = vadd.f32 %v995_v53, %v2796_v60 }
 0x20b   :  { %v1077_v40 = vmul.f32 %v2805_v42, %v1057_v54  ;;  %v1058_v36 = vmax.f32 %v1004_v56, 0.0 }
 0x20c   :  { %v1075_v2 = vmul.f32 %v2805_v42, %v1055_v38  ;;  %v1056_v12 = vmax.f32 %v996_v31, 0.0 }
 0x20d   :  { %v1078_v37 = vmul.f32 %v2805_v42, %v1058_v36  ;;  %v1097_v33 = vadd.f32 %v2818_v63, %v1077_v40 }
 0x20e   :  { %v1076_v23 = vmul.f32 %v2805_v42, %v1056_v12  ;;  %v2827_v45 = vadd.f32 %v2818_v63, %v1075_v2 }
 0x20f   :  { %v1098_v20 = vadd.f32 %v2818_v63, %v1078_v37  ;;  %v1161_v19 = vrot.slane %v1097_v33, 1  ;;  %v1113_v34 = vrot.slane %v1097_v33, 7 }
 0x210   :  { %1207 = vrot.lane.b32.xlu0 %v2827_v45, %s2002_s2  ;;  %v1096_v9 = vadd.f32 %v2818_v63, %v1076_v23  ;;  %v1159_v49 = vrot.slane %v2827_v45, 1  ;;  %v1111_v10 = vrot.slane %v2827_v45, 7 }
 0x211   :  { %v1162_v7 = vrot.slane %v1098_v20, 1  ;;  %v1114_v6 = vrot.slane %v1098_v20, 7 }
 0x212   :  { %1209 = vrot.lane.b32.xlu1 %v1096_v9, %s2002_s2  ;;  %v1160_v43 = vrot.slane %v1096_v9, 1  ;;  %v1112_v16 = vrot.slane %v1096_v9, 7 }
 0x213   :  { %v2838_v62 = vsel %vm460_vm6, %v1113_v34, %v1114_v6  ;;  %v2842_v59 = vsel %vm565_vm10, %v1161_v19, %v1162_v7 }
 0x214   :  { %1211 = vrot.lane.b32.xlu0 %v1097_v33, %s2002_s2  ;;  %v1188_v26 = vsel %vm565_vm10, %v1160_v43, %v1161_v19  ;;  %v1189_v41 = vsel %vm565_vm10, %v1159_v49, %v1160_v43  ;;  %v2855_v61 = vsel %vm460_vm6, %v1111_v10, %v1112_v16  ;;  %v2859_v1 = vsel %vm460_vm6, %v1112_v16, %v1113_v34 }
 0x215   :  { %v1192_v29 = vmul.f32 %v2173_v3, %v1188_v26  ;;  %v1145_v45 = vmul.f32 %v3222_v58, %v2859_v1 }
 0x216   :  { %1213 = vrot.lane.b32.xlu1 %v1098_v20, %s2002_s2  ;;  %v1897_v13 = vpop.f32.mrb[4].mxu0 }
 0x217   :  { %v1017_v14 = vadd.f32 %v1897_v13, %v2796_v60  ;;  %v1008_v32 = vpop.f32.mrb[5].mxu0  ;;  %v1263_v21 = vpack.c.bf16 %v1192_v29, %v1189_v41 }
 0x218   :  { %v1009_v30 = vadd.f32 %v1008_v32, %v2796_v60  ;;  %v1898_v25 = vpop.f32.mrb[6].mxu0 }
 0x219   :  { %v1061_v27 = vmax.f32 %v1017_v14, 0.0  ;;  %v1020_v22 = vadd.f32 %v1898_v25, %v2796_v60  ;;  %v1011_v28 = vpop.f32.mrb[7].mxu0  ;;  %1435 = vmatprep.mubr.bf16.mxu1 %v1263_v21 }
 0x21a   :  { %v1059_v44 = vmax.f32 %v1009_v30, 0.0  ;;  %v1012_v47 = vadd.f32 %v1011_v28, %v2796_v60 }
 0x21b   :  { %v1081_v3 = vmul.f32 %v2805_v42, %v1061_v27  ;;  %v1062_v54 = vmax.f32 %v1020_v22, 0.0 }
 0x21c   :  { %v1079_v56 = vmul.f32 %v2805_v42, %v1059_v44  ;;  %v1060_v53 = vmax.f32 %v1012_v47, 0.0 }
 0x21d   :  { %v1082_v57 = vmul.f32 %v2805_v42, %v1062_v54  ;;  %v1101_v38 = vadd.f32 %v2818_v63, %v1081_v3 }
 0x21e   :  { %v1080_v31 = vmul.f32 %v2805_v42, %v1060_v53  ;;  %v1099_v40 = vadd.f32 %v2818_v63, %v1079_v56 }
 0x21f   :  { %v1102_v36 = vadd.f32 %v2818_v63, %v1082_v57  ;;  %v1165_v33 = vrot.slane %v1101_v38, 1  ;;  %v1117_v20 = vrot.slane %v1101_v38, 7 }
 0x220   :  { %1215 = vrot.lane.b32.xlu0 %v1099_v40, %s2002_s2  ;;  %v1163_v2 = vrot.slane %v1099_v40, 1  ;;  %v1100_v12 = vadd.f32 %v2818_v63, %v1080_v31  ;;  %v1115_v37 = vrot.slane %v1099_v40, 7 }
 0x221   :  { %v1166_v23 = vrot.slane %v1102_v36, 1  ;;  %v1118_v9 = vrot.slane %v1102_v36, 7 }
 0x222   :  { %1217 = vrot.lane.b32.xlu1 %v1100_v12, %s2002_s2  ;;  %v1164_v19 = vrot.slane %v1100_v12, 1  ;;  %v1186_v34 = vsel %vm565_vm10, %v1162_v7, %v1163_v2  ;;  %v2881_v43 = vsel %vm460_vm6, %v1114_v6, %v1115_v37  ;;  %v1116_v16 = vrot.slane %v1100_v12, 7 }
 0x223   :  { %v2884_v26 = vmul.f32 %v2135_v48, %v1186_v34  ;;  %v2888_v41 = vsel %vm460_vm6, %v1117_v20, %v1118_v9  ;;  %v2892_v29 = vsel %vm565_vm10, %v1165_v33, %v1166_v23 }
 0x224   :  { %1219 = vrot.lane.b32.xlu0 %v1101_v38, %s2002_s2  ;;  %v1184_v7 = vsel %vm565_vm10, %v1164_v19, %v1165_v33  ;;  %v2899_v6 = vsel %vm565_vm10, %v1163_v2, %v1164_v19  ;;  %v2903_v48 = vsel %vm460_vm6, %v1115_v37, %v1116_v16  ;;  %v2907_v13 = vsel %vm460_vm6, %v1116_v16, %v1117_v20 }
 0x225   :  { %v1264_v14 = vpack.c.bf16 %v2884_v26, %v2842_v59  ;;  %v2912_v32 = vmul.f32 %v2196_v11, %v1184_v7  ;;  %v1149_v59 = vmul.f32 %v3224_v50, %v2907_v13 }
 0x226   :  { %1221 = vrot.lane.b32.xlu1 %v1102_v36, %s2002_s2  ;;  %v1901_v21 = vpop.f32.mrb[8].mxu0 }
 0x227   :  { %v1033_v30 = vadd.f32 %v1901_v21, %v2796_v60  ;;  %v1024_v25 = vpop.f32.mrb[9].mxu0  ;;  %v1265_v27 = vpack.c.bf16 %v2912_v32, %v2899_v6 }
 0x228   :  { %v1025_v22 = vadd.f32 %v1024_v25, %v2796_v60  ;;  %v1902_v28 = vpop.f32.mrb[10].mxu0 }
 0x229   :  { %v1065_v44 = vmax.f32 %v1033_v30, 0.0  ;;  %v1036_v47 = vadd.f32 %v1902_v28, %v2796_v60  ;;  %v1027_v3 = vpop.f32.mrb[11].mxu0 }
 0x22a   :  { %v1063_v54 = vmax.f32 %v1025_v22, 0.0  ;;  %v1028_v11 = vadd.f32 %v1027_v3, %v2796_v60 }
 0x22b   :  { %v1085_v56 = vmul.f32 %v2805_v42, %v1065_v44  ;;  %v1066_v53 = vmax.f32 %v1036_v47, 0.0 }
 0x22c   :  { %v1083_v57 = vmul.f32 %v2805_v42, %v1063_v54  ;;  %v1064_v38 = vmax.f32 %v1028_v11, 0.0 }
 0x22d   :  { %v1086_v31 = vmul.f32 %v2805_v42, %v1066_v53  ;;  %v1105_v40 = vadd.f32 %v2818_v63, %v1085_v56 }
 0x22e   :  { %v1084_v36 = vmul.f32 %v2805_v42, %v1064_v38  ;;  %v1103_v2 = vadd.f32 %v2818_v63, %v1083_v57 }
 0x22f   :  { %v1106_v12 = vadd.f32 %v2818_v63, %v1086_v31  ;;  %v1169_v19 = vrot.slane %v1105_v40, 1  ;;  %v1121_v16 = vrot.slane %v1105_v40, 7 }
 0x230   :  { %1223 = vrot.lane.b32.xlu0 %v1103_v2, %s2002_s2  ;;  %v1167_v37 = vrot.slane %v1103_v2, 1  ;;  %v1104_v33 = vadd.f32 %v2818_v63, %v1084_v36  ;;  %v1119_v20 = vrot.slane %v1103_v2, 7 }
 0x231   :  { %v1170_v34 = vrot.slane %v1106_v12, 1  ;;  %v1122_v7 = vrot.slane %v1106_v12, 7 }
 0x232   :  { %1225 = vrot.lane.b32.xlu1 %v1104_v33, %s2002_s2  ;;  %v1168_v21 = vrot.slane %v1104_v33, 1  ;;  %v1182_v30 = vsel %vm565_vm10, %v1166_v23, %v1167_v37  ;;  %v2935_v25 = vsel %vm460_vm6, %v1118_v9, %v1119_v20  ;;  %v1120_v22 = vrot.slane %v1104_v33, 7 }
 0x233   :  { %v2938_v28 = vmul.f32 %v2210_v17, %v1182_v30  ;;  %v2942_v44 = vsel %vm460_vm6, %v1121_v16, %v1122_v7  ;;  %v2946_v47 = vsel %vm565_vm10, %v1169_v19, %v1170_v34 }
 0x234   :  { %1227 = vrot.lane.b32.xlu0 %v1105_v40, %s2002_s2  ;;  %v1180_v23 = vsel %vm565_vm10, %v1168_v21, %v1169_v19  ;;  %v2953_v9 = vsel %vm565_vm10, %v1167_v37, %v1168_v21  ;;  %v2957_v17 = vsel %vm460_vm6, %v1119_v20, %v1120_v22  ;;  %v2961_v3 = vsel %vm460_vm6, %v1120_v22, %v1121_v16 }
 0x235   :  { %v1266_v54 = vpack.c.bf16 %v2938_v28, %v2892_v29  ;;  %v2966_v11 = vmul.f32 %v2250_v51, %v1180_v23  ;;  %v1153_v29 = vmul.f32 %v2241_v46, %v2961_v3 }
 0x236   :  { %1229 = vrot.lane.b32.xlu1 %v1106_v12, %s2002_s2  ;;  %v1905_v56 = vpop.f32.mrb[12].mxu0 }
 0x237   :  { %v1049_v53 = vadd.f32 %v1905_v56, %v2796_v60  ;;  %v1040_v57 = vpop.f32.mrb[13].mxu0  ;;  %v1267_v38 = vpack.c.bf16 %v2966_v11, %v2953_v9 }
 0x238   :  { %v1041_v31 = vadd.f32 %v1040_v57, %v2796_v60  ;;  %v1906_v40 = vpop.f32.mrb[14].mxu0 }
 0x239   :  { %v1069_v36 = vmax.f32 %v1049_v53, 0.0  ;;  %v1052_v2 = vadd.f32 %v1906_v40, %v2796_v60  ;;  %v1043_v37 = vpop.f32.mrb[15].mxu0 }
 0x23a   :  { %v1067_v33 = vmax.f32 %v1041_v31, 0.0  ;;  %v1044_v51 = vadd.f32 %v1043_v37, %v2796_v60 }
 0x23b   :  { %v1089_v20 = vmul.f32 %v2805_v42, %v1069_v36  ;;  %v1070_v12 = vmax.f32 %v1052_v2, 0.0 }
 0x23c   :  { %v1087_v19 = vmul.f32 %v2805_v42, %v1067_v33  ;;  %v1068_v16 = vmax.f32 %v1044_v51, 0.0 }
 0x23d   :  { %v1090_v21 = vmul.f32 %v2805_v42, %v1070_v12  ;;  %v1109_v30 = vadd.f32 %v2818_v63, %v1089_v20 }
 0x23e   :  { %v1088_v22 = vmul.f32 %v2805_v42, %v1068_v16  ;;  %v1107_v23 = vadd.f32 %v2818_v63, %v1087_v19 }
 0x23f   :  { %v1110_v56 = vadd.f32 %v2818_v63, %v1090_v21  ;;  %v1173_v31 = vrot.slane %v1109_v30, 1  ;;  %v1125_v2 = vrot.slane %v1109_v30, 7 }
 0x240   :  { %1231 = vrot.lane.b32.xlu0 %v1107_v23, %s2002_s2  ;;  %v1171_v53 = vrot.slane %v1107_v23, 1  ;;  %v1108_v60 = vadd.f32 %v2818_v63, %v1088_v22  ;;  %v1123_v57 = vrot.slane %v1107_v23, 7 }
 0x241   :  { %v1174_v40 = vrot.slane %v1110_v56, 1  ;;  %v1126_v36 = vrot.slane %v1110_v56, 7 }
 0x242   :  { %1233 = vrot.lane.b32.xlu1 %v1108_v60, %s2002_s2  ;;  %v1172_v37 = vrot.slane %v1108_v60, 1  ;;  %v1178_v42 = vsel %vm565_vm10, %v1170_v34, %v1171_v53  ;;  %v2989_v33 = vsel %vm460_vm6, %v1122_v7, %v1123_v57  ;;  %v1124_v51 = vrot.slane %v1108_v60, 7 }
 0x243   :  { %v1142_v63 = vsel %vm460_vm6, %v1126_v36, %v1111_v10  ;;  %v1202_v20 = vmul.f32 %v2262_v55, %v1178_v42  ;;  %v2998_v12 = vsel %vm460_vm6, %v1125_v2, %v1126_v36  ;;  %v3013_v21 = vsel %vm565_vm10, %v1173_v31, %v1174_v40 }
 0x244   :  { %1235 = vrot.lane.b32.xlu0 %v1109_v30, %s2002_s2  ;;  %v1176_v34 = vsel %vm565_vm10, %v1172_v37, %v1173_v31  ;;  %v1177_v7 = vsel %vm565_vm10, %v1171_v53, %v1172_v37  ;;  %v1129_v19 = vsel %vm460_vm6, %v1123_v57, %v1124_v51  ;;  %v1128_v55 = vsel %vm460_vm6, %v1124_v51, %v1125_v2 }
 0x245   :  { %v1268_v16 = vpack.c.bf16 %v1202_v20, %v2946_v47  ;;  %v1204_v10 = vmul.f32 %v2472_v24, %v1176_v34  ;;  %v1190_v30 = vsel %vm565_vm10, %v1174_v40, %v1159_v49  ;;  %v1143_v53 = vmul.f32 %v2178_v4, %v1142_v63 }
 0x246   :  { %1237 = vrot.lane.b32.xlu1 %v1110_v56, %s2002_s2  ;;  %v1206_v23 = vmul.f32 %v2183_v5, %v1190_v30  ;;  %v1157_v46 = vmul.f32 %v2272_v8, %v1128_v55  ;;  %v1622_v8 = vld [vmem:[%s3177_s4 + $0x10] sm:$0xff]  ;;  %vm1654_vm6 = vcmask 1044484  }
 0x247   :  { %v1269_v22 = vpack.c.bf16 %v1204_v10, %v1177_v7  ;;  %v1624_v10 = vld [vmem:[%s3177_s4 + $0x20] sm:$0xff] }
 0x248   :  { %v1270_v47 = vpack.c.bf16 %v1206_v23, %v3013_v21  ;;  %v1625_v21 = vld [vmem:[%s3177_s4 + $0x28] sm:$0xff]  ;;  %v1627_v23 = vld [vmem:[%s3177_s4 + $0x38] sm:$0xff] }
 0x249   :  { %v1949_v30 = vpack.c.bf16 %v1625_v21, %v1624_v10 }
 0x282   :  { %v1208_v24 = vpop.permute.xlu0 %1207 }
 0x283   :  { %v1239_v57 = vadd.f32 %v1208_v24, %v1143_v53  ;;  %v1628_v24 = vld [vmem:[%s3177_s4 + $0x40] sm:$0xff] }
 0x284   :  { %v1210_v60 = vpop.permute.xlu1 %1209  ;;  %v1955_v53 = vpack.c.bf16 %v1629_v39, %v1628_v24 }
 0x285   :  { %v1240_v31 = vadd.f32 %v1210_v60, %v2855_v61  ;;  %v1147_v61 = vmul.f32 %v3223_v35, %v2881_v43  ;;  %v1151_v43 = vmul.f32 %v3225_v0, %v2935_v25  ;;  %v1155_v0 = vmul.f32 %v2255_v52, %v2989_v33  ;;  %v1620_v52 = vld [vmem:[%s3177_s4] sm:$0xff]  ;;  %v1621_v33 = vld [vmem:[%s3177_s4 + $0x8] sm:$0xff]  ;;  %v1630_v60 = vld [vmem:[%s3177_s4 + $0x50] sm:$0xff] }
 0x286   :  { %v1212_v36 = vpop.permute.xlu0 %1211 }
 0x287   :  { %v1255_v2 = vpack.c.bf16 %v1240_v31, %v1239_v57  ;;  %v1241_v37 = vadd.f32 %v1212_v36, %v1145_v45  ;;  %v1631_v57 = vld [vmem:[%s3177_s4 + $0x58] sm:$0xff]  ;;  %v1632_v36 = vld [vmem:[%s3177_s4 + $0x60] sm:$0xff] }
 0x288   :  { %v1214_v56 = vpop.permute.xlu1 %1213  ;;  %v1958_v31 = vpack.c.bf16 %v1631_v57, %v1630_v60 }
 0x289   :  { %v1242_v49 = vadd.f32 %v1214_v56, %v2838_v62  ;;  %1436 = vmatmul.mubr.bf16.vlgmr.msra.gmra.mrb[0].mxu1 %v1255_v2  ;;  %v1633_v2 = vld [vmem:[%s3177_s4 + $0x68] sm:$0xff]  ;;  %v1634_v56 = vld [vmem:[%s3177_s4 + $0x70] sm:$0xff] }
 0x28a   :  { %1443 = vmatprep.mubr.bf16.mxu1 %v1264_v14  ;;  %v1961_v45 = vpack.c.bf16 %v1633_v2, %v1632_v36 }
 0x28b   :  { %v1256_v5 = vpack.c.bf16 %v1242_v49, %v1241_v37  ;;  %v1635_v37 = vld [vmem:[%s3177_s4 + $0x78] sm:$0xff] }
 0x28c   :  { %v1964_v49 = vpack.c.bf16 %v1635_v37, %v1634_v56 }
 0x291   :  { %1444 = vmatmul.mubr.bf16.gmra.mrb[4].mxu1 %v1256_v5 }
 0x292   :  { %1451 = vmatprep.mubr.bf16.mxu1 %v1265_v27  ;;  %v1216_v4 = vpop.permute.xlu0 %1215 }
 0x293   :  { %v1243_v1 = vadd.f32 %v1216_v4, %v1147_v61  ;;  %v3227_v4 = vsub.s32 1, %v2083_v18 }
 0x294   :  { %v1218_v58 = vpop.permute.xlu1 %1217 }
 0x295   :  { %v1244_v40 = vadd.f32 %v1218_v58, %v2903_v48  ;;  %v3107_v61 = vrot.slane %v2802_v15, %v3227_v4 }
 0x296   :  { %v1220_v62 = vpop.permute.xlu0 %1219 }
 0x297   :  { %v1257_v42 = vpack.c.bf16 %v1244_v40, %v1243_v1  ;;  %v1245_v14 = vadd.f32 %v1220_v62, %v1149_v59  ;;  %v3228_v59 = vsub.s32 2, %v2083_v18 }
 0x298   :  { %v1222_v26 = vpop.permute.xlu1 %1221 }
 0x299   :  { %v1246_v51 = vadd.f32 %v1222_v26, %v2888_v41  ;;  %1452 = vmatmul.mubr.bf16.gmra.mrb[8].mxu1 %v1257_v42  ;;  %v3113_v26 = vrot.slane %v2802_v15, %v3228_v59 }
 0x29a   :  { %1459 = vmatprep.mubr.bf16.mxu1 %v1266_v54 }
 0x29b   :  { %v1258_v6 = vpack.c.bf16 %v1246_v51, %v1245_v14 }
 0x2a1   :  { %1460 = vmatmul.mubr.bf16.gmra.mrb[12].mxu1 %v1258_v6 }
 0x2a2   :  { %1467 = vmatprep.mubr.bf16.mxu1 %v1267_v38  ;;  %v1224_v35 = vpop.permute.xlu0 %1223 }
 0x2a3   :  { %v1247_v48 = vadd.f32 %v1224_v35, %v1151_v43  ;;  %v3229_v43 = vsub.s32 3, %v2083_v18 }
 0x2a4   :  { %v1226_v50 = vpop.permute.xlu1 %1225 }
 0x2a5   :  { %v1248_v13 = vadd.f32 %v1226_v50, %v2957_v17  ;;  %v3120_v50 = vrot.slane %v2802_v15, %v3229_v43 }
 0x2a6   :  { %v1228_v41 = vpop.permute.xlu0 %1227 }
 0x2a7   :  { %v1259_v32 = vpack.c.bf16 %v1248_v13, %v1247_v48  ;;  %v1249_v28 = vadd.f32 %v1228_v41, %v1153_v29 }
 0x2a8   :  { %v1230_v27 = vpop.permute.xlu1 %1229 }
 0x2a9   :  { %v1250_v54 = vadd.f32 %v1230_v27, %v2942_v44  ;;  %1468 = vmatmul.mubr.bf16.gmra.mrb[16].mxu1 %v1259_v32 }
 0x2aa   :  { %1475 = vmatprep.mubr.bf16.mxu1 %v1268_v16  ;;  %v2003_v16 = vmov 0.0|0.0  }
 0x2ab   :  { %v1260_v9 = vpack.c.bf16 %v1250_v54, %v1249_v28  ;;  %1942 = vmatprep.subr.bf16.mxu0 %v2003_v16 }
 0x2b1   :  { %1476 = vmatmul.mubr.bf16.gmra.mrb[20].mxu1 %v1260_v9 }
 0x2b2   :  { %1483 = vmatprep.mubr.bf16.mxu1 %v1269_v22  ;;  %v1232_v11 = vpop.permute.xlu0 %1231  ;;  %v1626_v22 = vld [vmem:[%s3177_s4 + $0x30] sm:$0xff] }
 0x2b3   :  { %v1251_v17 = vadd.f32 %v1232_v11, %v1155_v0 }
 0x2b4   :  { %v1234_v25 = vpop.permute.xlu1 %1233 }
 0x2b5   :  { %v1252_v38 = vadd.f32 %v1234_v25, %v1129_v19  ;;  %v1943_v19 = vpack.c.bf16 %v1621_v33, %v1620_v52 }
 0x2b6   :  { %v1236_v63 = vpop.permute.xlu0 %1235 }
 0x2b7   :  { %v1261_v20 = vpack.c.bf16 %v1252_v38, %v1251_v17  ;;  %v1253_v34 = vadd.f32 %v1236_v63, %v1157_v46  ;;  %1944 = vmatpush3.bf16.msra.mxu0 %v1943_v19 }
 0x2b8   :  { %v1238_v3 = vpop.permute.xlu1 %1237  ;;  %1945 = vmatprep.subr.bf16.mxu0 %v2003_v16 }
 0x2b9   :  { %v1254_v44 = vadd.f32 %v1238_v3, %v2998_v12  ;;  %1484 = vmatmul.mubr.bf16.gmra.mrb[24].mxu1 %v1261_v20  ;;  %v1623_v12 = vld [vmem:[%s3177_s4 + $0x18] sm:$0xff] }
 0x2ba   :  { %1491 = vmatprep.mubr.bf16.mxu1 %v1270_v47  ;;  %v1946_v55 = vpack.c.bf16 %v1623_v12, %v1622_v8  ;;  %v1952_v47 = vpack.c.bf16 %v1627_v23, %v1626_v22 }
 0x2bb   :  { %v1262_v7 = vpack.c.bf16 %v1254_v44, %v1253_v34 }
 0x2bc   :  { %1947 = vmatpush3.bf16.msra.mxu0 %v1946_v55 }
 0x2bd   :  { %1948 = vmatprep.subr.bf16.mxu0 %v2003_v16 }
 0x2c0   :  { %1950 = vmatpush3.bf16.msra.mxu0 %v1949_v30 }
 0x2c1   :  { %1492 = vmatmul.mubr.bf16.gmra.mrb[28].mxu1 %v1262_v7  ;;  %1951 = vmatprep.subr.bf16.mxu0 %v2003_v16 }
 0x2c4   :  { %1953 = vmatpush3.bf16.msra.mxu0 %v1952_v47 }
 0x2c5   :  { %1954 = vmatprep.subr.bf16.mxu0 %v2003_v16 }
 0x2c8   :  { %1956 = vmatpush3.bf16.msra.mxu0 %v1955_v53 }
 0x2c9   :  { %1957 = vmatprep.subr.bf16.mxu0 %v2003_v16 }
 0x2cc   :  { %1959 = vmatpush3.bf16.msra.mxu0 %v1958_v31 }
 0x2cd   :  { %1960 = vmatprep.subr.bf16.mxu0 %v2003_v16 }
 0x2d0   :  { %1962 = vmatpush3.bf16.msra.mxu0 %v1961_v45 }
 0x2d1   :  { %1963 = vmatprep.subr.bf16.mxu0 %v2003_v16 }
 0x2d4   :  { %1965 = vmatpush3.bf16.msra.mxu0 %v1964_v49 }
 0x35c   :  { %v1810_v5 = vpop.f32.mrb[0].mxu1 }
 0x35d   :  { %v1811_v58 = vpop.f32.mrb[1].mxu1 }
 0x35e   :  { %v1812_v1 = vadd.f32 %v1811_v58, %v1810_v5  ;;  %v1813_v40 = vpop.f32.mrb[2].mxu1 }
 0x35f   :  { %v1814_v62 = vpop.f32.mrb[3].mxu1 }
 0x360   :  { %v1438_v42 = vadd.f32 %v1812_v1, %v3107_v61  ;;  %v1815_v14 = vadd.f32 %v1814_v62, %v1813_v40 }
 0x362   :  { %v1500_v51 = vmax.f32 %v1438_v42, 0.0  ;;  %v1441_v6 = vadd.f32 %v1815_v14, %v3107_v61 }
 0x364   :  { %v1520_v35 = vmul.f32 %v3113_v26, %v1500_v51  ;;  %v1501_v48 = vmax.f32 %v1441_v6, 0.0  ;;  %v1816_v13 = vpop.f32.mrb[4].mxu1 }
 0x365   :  { %v1817_v41 = vpop.f32.mrb[5].mxu1 }
 0x366   :  { %v1521_v32 = vmul.f32 %v3113_v26, %v1501_v48  ;;  %v1818_v29 = vadd.f32 %v1817_v41, %v1816_v13  ;;  %v1819_v27 = vpop.f32.mrb[6].mxu1  ;;  %v1540_v54 = vadd.f32 %v3120_v50, %v1520_v35 }
 0x367   :  { %v1820_v28 = vpop.f32.mrb[7].mxu1 }
 0x368   :  { %v1541_v9 = vadd.f32 %v3120_v50, %v1521_v32  ;;  %v1446_v11 = vadd.f32 %v1818_v29, %v3107_v61  ;;  %v1821_v0 = vadd.f32 %v1820_v28, %v1819_v27 }
 0x36a   :  { %v1556_v25 = vadd.f32 %v1541_v9, %v1540_v54  ;;  %v1502_v17 = vmax.f32 %v1446_v11, 0.0  ;;  %v1449_v38 = vadd.f32 %v1821_v0, %v3107_v61 }
 0x36c   :  { %v1557_v63 = vrot.slane %v1556_v25, 4  ;;  %v1522_v20 = vmul.f32 %v3113_v26, %v1502_v17  ;;  %v1503_v46 = vmax.f32 %v1449_v38, 0.0  ;;  %v1822_v3 = vpop.f32.mrb[8].mxu1 }
 0x36d   :  { %v1823_v34 = vpop.f32.mrb[9].mxu1 }
 0x36e   :  { %v1558_v44 = vadd.f32 %v1557_v63, %v1556_v25  ;;  %v1523_v7 = vmul.f32 %v3113_v26, %v1503_v46  ;;  %v1824_v16 = vadd.f32 %v1823_v34, %v1822_v3  ;;  %v1825_v52 = vpop.f32.mrb[10].mxu1  ;;  %v1542_v33 = vadd.f32 %v3120_v50, %v1522_v20 }
 0x36f   :  { %v1826_v19 = vpop.f32.mrb[11].mxu1 }
 0x370   :  { %v1559_v8 = vrot.slane %v1558_v44, 2  ;;  %v1543_v12 = vadd.f32 %v3120_v50, %v1523_v7  ;;  %v1454_v10 = vadd.f32 %v1824_v16, %v3107_v61  ;;  %v1827_v55 = vadd.f32 %v1826_v19, %v1825_v52 }
 0x372   :  { %v1563_v21 = vadd.f32 %v1543_v12, %v1542_v33  ;;  %v1504_v30 = vmax.f32 %v1454_v10, 0.0  ;;  %v1457_v22 = vadd.f32 %v1827_v55, %v3107_v61  ;;  %v1560_v23 = vadd.f32 %v1559_v8, %v1558_v44 }
 0x374   :  { %v1564_v47 = vrot.slane %v1563_v21, 4  ;;  %v1524_v24 = vmul.f32 %v3113_v26, %v1504_v30  ;;  %v1505_v39 = vmax.f32 %v1457_v22, 0.0  ;;  %v1828_v53 = vpop.f32.mrb[12].mxu1  ;;  %v1561_v2 = vrot.slane %v1560_v23, 1 }
 0x375   :  { %v1829_v60 = vpop.f32.mrb[13].mxu1 }
 0x376   :  { %v1565_v57 = vadd.f32 %v1564_v47, %v1563_v21  ;;  %v1525_v31 = vmul.f32 %v3113_v26, %v1505_v39  ;;  %v1831_v36 = vpop.f32.mrb[14].mxu1  ;;  %v1830_v45 = vadd.f32 %v1829_v60, %v1828_v53  ;;  %v1544_v49 = vadd.f32 %v3120_v50, %v1524_v24 }
 0x377   :  { %v1832_v56 = vpop.f32.mrb[15].mxu1  ;;  %v1562_v42 = vadd.f32 %v1561_v2, %v1560_v23 }
 0x378   :  { %v1566_v37 = vrot.slane %v1565_v57, 2  ;;  %v1545_v5 = vadd.f32 %v3120_v50, %v1525_v31  ;;  %v1833_v4 = vadd.f32 %v1832_v56, %v1831_v36  ;;  %v1462_v58 = vadd.f32 %v1830_v45, %v3107_v61 }
 0x379   :  { %v1612_v28 = vmul.f32 0.0625, %v1562_v42 }
 0x37a   :  { %v1567_v1 = vadd.f32 %v1566_v37, %v1565_v57  ;;  %v1570_v40 = vadd.f32 %v1545_v5, %v1544_v49  ;;  %v1465_v62 = vadd.f32 %v1833_v4, %v3107_v61  ;;  %v1506_v59 = vmax.f32 %v1462_v58, 0.0 }
 0x37c   :  { %v1568_v14 = vrot.slane %v1567_v1, 1  ;;  %v1571_v51 = vrot.slane %v1570_v40, 4  ;;  %v1507_v6 = vmax.f32 %v1465_v62, 0.0  ;;  %v1834_v35 = vpop.f32.mrb[16].mxu1  ;;  %v1526_v43 = vmul.f32 %v3113_v26, %v1506_v59 }
 0x37d   :  { %v1835_v48 = vpop.f32.mrb[17].mxu1 }
 0x37e   :  { %v1569_v13 = vadd.f32 %v1568_v14, %v1567_v1  ;;  %v1572_v41 = vadd.f32 %v1571_v51, %v1570_v40  ;;  %v1527_v32 = vmul.f32 %v3113_v26, %v1507_v6  ;;  %v1836_v29 = vadd.f32 %v1835_v48, %v1834_v35  ;;  %v1837_v27 = vpop.f32.mrb[18].mxu1 }
 0x37f   :  { %v1546_v54 = vadd.f32 %v3120_v50, %v1526_v43  ;;  %v1838_v9 = vpop.f32.mrb[19].mxu1 }
 0x380   :  { %v1613_v11 = vmul.f32 0.0625, %v1569_v13  ;;  %v1573_v0 = vrot.slane %v1572_v41, 2  ;;  %v1547_v25 = vadd.f32 %v3120_v50, %v1527_v32  ;;  %v1470_v17 = vadd.f32 %v1836_v29, %v3107_v61 }
 0x381   :  { %v1839_v38 = vadd.f32 %v1838_v9, %v1837_v27 }
 0x382   :  { %v1574_v63 = vadd.f32 %v1573_v0, %v1572_v41  ;;  %v1577_v20 = vadd.f32 %v1547_v25, %v1546_v54  ;;  %v1508_v46 = vmax.f32 %v1470_v17, 0.0  ;;  %v1649_v3 = vsel %vm1648_vm3, %v1613_v11, %v1612_v28 }
 0x383   :  { %v1473_v34 = vadd.f32 %v1839_v38, %v3107_v61 }
 0x384   :  { %v1575_v44 = vrot.slane %v1574_v63, 1  ;;  %v1578_v7 = vrot.slane %v1577_v20, 4  ;;  %v1840_v16 = vpop.f32.mrb[20].mxu1  ;;  %v1528_v52 = vmul.f32 %v3113_v26, %v1508_v46 }
 0x385   :  { %v1509_v33 = vmax.f32 %v1473_v34, 0.0  ;;  %v1841_v19 = vpop.f32.mrb[21].mxu1 }
 0x386   :  { %v1576_v8 = vadd.f32 %v1575_v44, %v1574_v63  ;;  %v1579_v12 = vadd.f32 %v1578_v7, %v1577_v20  ;;  %v1842_v10 = vadd.f32 %v1841_v19, %v1840_v16  ;;  %v1843_v55 = vpop.f32.mrb[22].mxu1  ;;  %v1548_v39 = vadd.f32 %v3120_v50, %v1528_v52 }
 0x387   :  { %v1529_v21 = vmul.f32 %v3113_v26, %v1509_v33  ;;  %v1844_v30 = vpop.f32.mrb[23].mxu1 }
 0x388   :  { %v1614_v22 = vmul.f32 0.0625, %v1576_v8  ;;  %v1580_v23 = vrot.slane %v1579_v12, 2  ;;  %v1478_v47 = vadd.f32 %v1842_v10, %v3107_v61  ;;  %v1845_v24 = vadd.f32 %v1844_v30, %v1843_v55 }
 0x389   :  { %v1549_v53 = vadd.f32 %v3120_v50, %v1529_v21 }
 0x38a   :  { %v1581_v60 = vadd.f32 %v1580_v23, %v1579_v12  ;;  %v1510_v57 = vmax.f32 %v1478_v47, 0.0  ;;  %v1481_v31 = vadd.f32 %v1845_v24, %v3107_v61  ;;  %v1651_v36 = vsel %vm1650_vm4, %v1614_v22, %v1649_v3 }
 0x38b   :  { %v1584_v2 = vadd.f32 %v1549_v53, %v1548_v39 }
 0x38c   :  { %v1582_v45 = vrot.slane %v1581_v60, 1  ;;  %v1530_v56 = vmul.f32 %v3113_v26, %v1510_v57  ;;  %v1511_v37 = vmax.f32 %v1481_v31, 0.0  ;;  %v1846_v49 = vpop.f32.mrb[24].mxu1 }
 0x38d   :  { %v1585_v5 = vrot.slane %v1584_v2, 4  ;;  %v1847_v4 = vpop.f32.mrb[25].mxu1 }
 0x38e   :  { %v1583_v58 = vadd.f32 %v1582_v45, %v1581_v60  ;;  %v1531_v1 = vmul.f32 %v3113_v26, %v1511_v37  ;;  %v1848_v40 = vadd.f32 %v1847_v4, %v1846_v49  ;;  %v1849_v62 = vpop.f32.mrb[26].mxu1  ;;  %v1550_v59 = vadd.f32 %v3120_v50, %v1530_v56 }
 0x38f   :  { %v1586_v42 = vadd.f32 %v1585_v5, %v1584_v2  ;;  %v1850_v14 = vpop.f32.mrb[27].mxu1 }
 0x390   :  { %v1615_v51 = vmul.f32 0.0625, %v1583_v58  ;;  %v1551_v6 = vadd.f32 %v3120_v50, %v1531_v1  ;;  %v1486_v35 = vadd.f32 %v1848_v40, %v3107_v61  ;;  %v1851_v43 = vadd.f32 %v1850_v14, %v1849_v62 }
 0x391   :  { %v1587_v48 = vrot.slane %v1586_v42, 2 }
 0x392   :  { %v1591_v13 = vadd.f32 %v1551_v6, %v1550_v59  ;;  %v1512_v41 = vmax.f32 %v1486_v35, 0.0  ;;  %v1489_v32 = vadd.f32 %v1851_v43, %v3107_v61  ;;  %v1653_v29 = vsel %vm1652_vm5, %v1615_v51, %v1651_v36 }
 0x393   :  { %v1588_v27 = vadd.f32 %v1587_v48, %v1586_v42 }
 0x394   :  { %v1592_v28 = vrot.slane %v1591_v13, 4  ;;  %v1532_v54 = vmul.f32 %v3113_v26, %v1512_v41  ;;  %v1513_v9 = vmax.f32 %v1489_v32, 0.0  ;;  %v1852_v11 = vpop.f32.mrb[28].mxu1 }
 0x395   :  { %v1589_v0 = vrot.slane %v1588_v27, 1  ;;  %v1853_v25 = vpop.f32.mrb[29].mxu1 }
 0x396   :  { %v1593_v17 = vadd.f32 %v1592_v28, %v1591_v13  ;;  %v1533_v38 = vmul.f32 %v3113_v26, %v1513_v9  ;;  %v1854_v63 = vadd.f32 %v1853_v25, %v1852_v11  ;;  %v1855_v20 = vpop.f32.mrb[30].mxu1  ;;  %v1552_v3 = vadd.f32 %v3120_v50, %v1532_v54 }
 0x397   :  { %v1590_v46 = vadd.f32 %v1589_v0, %v1588_v27  ;;  %v1856_v34 = vpop.f32.mrb[31].mxu1 }
 0x398   :  { %v1594_v44 = vrot.slane %v1593_v17, 2  ;;  %v1553_v7 = vadd.f32 %v3120_v50, %v1533_v38  ;;  %v1494_v16 = vadd.f32 %v1854_v63, %v3107_v61  ;;  %v1857_v52 = vadd.f32 %v1856_v34, %v1855_v20 }
 0x399   :  { %v1616_v33 = vmul.f32 0.0625, %v1590_v46 }
 0x39a   :  { %v1595_v19 = vadd.f32 %v1594_v44, %v1593_v17  ;;  %v1598_v8 = vadd.f32 %v1553_v7, %v1552_v3  ;;  %v1514_v12 = vmax.f32 %v1494_v16, 0.0  ;;  %v1497_v10 = vadd.f32 %v1857_v52, %v3107_v61 }
 0x39b   :  { %v1655_v55 = vsel %vm1654_vm6, %v1616_v33, %v1653_v29 }
 0x39c   :  { %v1596_v21 = vrot.slane %v1595_v19, 1  ;;  %v1599_v30 = vrot.slane %v1598_v8, 4  ;;  %v1534_v22 = vmul.f32 %v3113_v26, %v1514_v12  ;;  %v1515_v23 = vmax.f32 %v1497_v10, 0.0 }
 0x39e   :  { %v1597_v47 = vadd.f32 %v1596_v21, %v1595_v19  ;;  %v1600_v24 = vadd.f32 %v1599_v30, %v1598_v8  ;;  %v1535_v39 = vmul.f32 %v3113_v26, %v1515_v23  ;;  %v1554_v60 = vadd.f32 %v3120_v50, %v1534_v22 }
 0x3a0   :  { %v1601_v53 = vrot.slane %v1600_v24, 2  ;;  %v1555_v57 = vadd.f32 %v3120_v50, %v1535_v39  ;;  %v1617_v31 = vmul.f32 0.0625, %v1597_v47  ;;  %v3230_v50 = vsub.s32 4, %v2083_v18 }
 0x3a2   :  { %v1602_v36 = vadd.f32 %v1601_v53, %v1600_v24  ;;  %v1605_v2 = vadd.f32 %v1555_v57, %v1554_v60  ;;  %v1657_v61 = vsel %vm1656_vm7, %v1617_v31, %v1655_v55  ;;  %v1639_v59 = vrot.slane %v2802_v15, %v3230_v50 }
 0x3a4   :  { %v1606_v45 = vrot.slane %v1605_v2, 4  ;;  %v1603_v56 = vrot.slane %v1602_v36, 1 }
 0x3a6   :  { %v1607_v37 = vadd.f32 %v1606_v45, %v1605_v2  ;;  %v1604_v49 = vadd.f32 %v1603_v56, %v1602_v36 }
 0x3a8   :  { %v1608_v5 = vrot.slane %v1607_v37, 2  ;;  %v1618_v4 = vmul.f32 0.0625, %v1604_v49 }
 0x3aa   :  { %v1609_v58 = vadd.f32 %v1608_v5, %v1607_v37  ;;  %v1659_v1 = vsel %vm1658_vm8, %v1618_v4, %v1657_v61 }
 0x3ac   :  { %v1610_v26 = vrot.slane %v1609_v58, 1 }
 0x3ae   :  { %v1611_v40 = vadd.f32 %v1610_v26, %v1609_v58 }
 0x3b0   :  { %v1619_v62 = vmul.f32 0.0625, %v1611_v40 }
 0x3b2   :  { %v1661_v42 = vsel %vm1660_vm9, %v1619_v62, %v1659_v1 }
 0x3b3   :  { %1940 = vmatmul.mubr.f32.vlgmr.msra.gmra.mrb[16].mxu0 %v1661_v42 }
 0x486   :  { %v1729_v14 = vpop.f32.mrb[16].mxu0 }
 0x487   :  { %v1730_v51 = vadd.f32 %v1729_v14, %v1639_v59  ;;  %v1941_v6 = vpop.f32.mrb[17].mxu0 }
 0x489   :  { %1733 = vst [vmem:[%s3178_s5] sm:$0xff] %v1730_v51 }

</bundles_post_ra>
